<compile_context>
chip_gen: v7x
topology: tpu7x:2x2x1
jax: 0.10.0
libtpu: 0.0.40
codegen_flags: <defaults>
</compile_context>

<pallas_src>
import math

import numpy as np
import jax
import jax.numpy as jnp
from jax.experimental import pallas as pl
from jax.experimental.pallas import tpu as pltpu

_EPS = 1e-8                               # kornia rgb_to_hsv eps
_H_NORM = 2.0 * 3.1416                    # module divides h_diff by 2*3.1416 (not 2*pi)
_SIGMA = 2.0
_TRUNCATE = 4.0                           # scipy.ndimage.gaussian_filter default
_RADIUS = int(_TRUNCATE * _SIGMA + 0.5)   # = 8
_KSIZE = 2 * _RADIUS + 1                  # = 17
_HALO = 8                                 # halo block rows (sublane aligned), must be >= _RADIUS
assert _RADIUS <= _HALO


def _gauss_weights():
    w = np.array([math.exp(-0.5 * (i - _RADIUS) ** 2 / (_SIGMA ** 2))
                  for i in range(_KSIZE)], np.float64)
    return w / w.sum()


_WEIGHTS = _gauss_weights()


def _reflect(idx, n):
    # scipy gaussian_filter default mode='reflect' == numpy 'symmetric' padding.
    if n == 1:
        return 0
    period = 2 * n
    idx = idx % period
    if idx >= n:
        idx = period - 1 - idx
    return idx


def _build_bh(w_dim):
    """(W, W) horizontal blur matrix, reflect boundary folded in.  out = x @ Bh."""
    bh = np.zeros((w_dim, w_dim), np.float64)
    for x in range(w_dim):
        for k in range(-_RADIUS, _RADIUS + 1):
            bh[_reflect(x + k, w_dim), x] += _WEIGHTS[k + _RADIUS]
    return bh.astype(np.float32)


def _build_av_full(h_dim):
    """(H, H) vertical blur matrix (whole-image fallback)."""
    av = np.zeros((h_dim, h_dim), np.float64)
    for r in range(h_dim):
        for k in range(-_RADIUS, _RADIUS + 1):
            av[r, _reflect(r + k, h_dim)] += _WEIGHTS[k + _RADIUS]
    return av.astype(np.float32)


def _build_av_blocks(h_dim, th):
    """(NT, TH, TH+2*_HALO) per-tile banded vertical blur matrices.

    Window column layout matches the in-kernel concat [top halo, main, bottom halo];
    halo blocks are clamped to the image exactly like the kernel's index_maps, and the
    reflect boundary is folded into the weights, so no padding is ever materialized.
    """
    nt = h_dim // th
    tb = th // _HALO
    hb = h_dim // _HALO
    win = th + 2 * _HALO
    av = np.zeros((nt, th, win), np.float64)
    for i in range(nt):
        base = i * th
        col_of = {base + j: _HALO + j for j in range(th)}        # main rows
        top_blk = max(i * tb - 1, 0)
        for j in range(_HALO):                                    # top halo rows
            col_of.setdefault(top_blk * _HALO + j, j)
        bot_blk = min(i * tb + tb, hb - 1)
        for j in range(_HALO):                                    # bottom halo rows
            col_of.setdefault(bot_blk * _HALO + j, _HALO + th + j)
        for r in range(th):
            for k in range(-_RADIUS, _RADIUS + 1):
                src = _reflect(base + r + k, h_dim)
                av[i, r, col_of[src]] += _WEIGHTS[k + _RADIUS]
    return av.astype(np.float32)


def _pick_tile_rows(h_dim):
    # assumes h_dim % 8 == 0; pick the largest tile <= 256 rows that divides H.
    if h_dim <= 256:
        return h_dim
    for th in range(256, 7, -8):
        if h_dim % th == 0:
            return th
    return h_dim


def _rgb_to_hsv(r, g, b):
    # kornia.color.rgb_to_hsv semantics: h in [0, 2*pi), s and v in [0, 1]
    maxc = jnp.maximum(jnp.maximum(r, g), b)
    minc = jnp.minimum(jnp.minimum(r, g), b)
    v = maxc
    deltac = maxc - minc
    s = deltac / (v + _EPS)
    d_safe = jnp.where(deltac == 0.0, jnp.ones_like(deltac), deltac)
    rc = maxc - r
    gc = maxc - g
    bc = maxc - b
    h1 = bc - gc
    h2 = (rc - bc) + 2.0 * deltac
    h3 = (gc - rc) + 4.0 * deltac
    h = jnp.where(maxc == r, h1, jnp.where(maxc == g, h2, h3)) / d_safe
    h = (h / 6.0) % 1.0
    h = (2.0 * math.pi) * h
    return h, s, v


def _hsv_diff_planes(w1, w2):
    # /255 folded here (inputs are raw 0..255 planes): saves a wrapper-side f32 copy.
    inv255 = jnp.float32(1.0 / 255.0)
    h1, s1, v1 = _rgb_to_hsv(w1[0] * inv255, w1[1] * inv255, w1[2] * inv255)
    h2, s2, v2 = _rgb_to_hsv(w2[0] * inv255, w2[1] * inv255, w2[2] * inv255)
    return (jnp.abs(h1 - h2) * jnp.float32(1.0 / _H_NORM),
            jnp.abs(s1 - s2),
            jnp.abs(v1 - v2))


def _blur_and_store(av, bh, diffs, out_ref):
    # Separable Gaussian blur as two MXU matmuls per channel (reflect folded into av/bh).
    for c, d in enumerate(diffs):
        tmp = jnp.dot(av, d, preferred_element_type=jnp.float32,
                      precision=jax.lax.Precision.HIGHEST)          # vertical pass
        out_ref[c] = jnp.dot(tmp, bh, preferred_element_type=jnp.float32,
                             precision=jax.lax.Precision.HIGHEST)   # horizontal pass


def _fused_tiled_kernel(av_ref, bh_ref, t1_ref, m1_ref, b1_ref,
                        t2_ref, m2_ref, b2_ref, out_ref):
    # Assemble the halo'd row window (3, TH+2*HALO, W) for both images.
    w1 = jnp.concatenate([t1_ref[...], m1_ref[...], b1_ref[...]], axis=1)
    w2 = jnp.concatenate([t2_ref[...], m2_ref[...], b2_ref[...]], axis=1)
    diffs = _hsv_diff_planes(w1, w2)
    _blur_and_store(av_ref[0], bh_ref[...], diffs, out_ref)


def _fused_single_kernel(av_ref, bh_ref, i1_ref, i2_ref, out_ref):
    diffs = _hsv_diff_planes(i1_ref[...], i2_ref[...])
    _blur_and_store(av_ref[...], bh_ref[...], diffs, out_ref)


def _fused_hsv_blur(img1, img2):
    """img1/img2: (3, H, W) float32 in [0, 255]. Returns blurred (3, H, W) diffs."""
    _, H, W = img1.shape
    bh = jnp.asarray(_build_bh(W))
    cparams = pltpu.CompilerParams(dimension_semantics=("parallel",),
                                   vmem_limit_bytes=64 * 1024 * 1024)

    if H % _HALO == 0:
        TH = _pick_tile_rows(H)
        NT = H // TH
        TB = TH // _HALO
        HB = H // _HALO
        WIN = TH + 2 * _HALO
        av = jnp.asarray(_build_av_blocks(H, TH))

        halo_top = pl.BlockSpec((3, _HALO, W),
                                lambda i: (0, jnp.maximum(i * TB - 1, 0), 0))
        halo_bot = pl.BlockSpec((3, _HALO, W),
                                lambda i: (0, jnp.minimum(i * TB + TB, HB - 1), 0))
        main = pl.BlockSpec((3, TH, W), lambda i: (0, i, 0))

        return pl.pallas_call(
            _fused_tiled_kernel,
            grid=(NT,),
            out_shape=jax.ShapeDtypeStruct((3, H, W), jnp.float32),
            in_specs=[pl.BlockSpec((1, TH, WIN), lambda i: (i, 0, 0)),   # Av tile
                      pl.BlockSpec((W, W), lambda i: (0, 0)),            # Bh (constant)
                      halo_top, main, halo_bot,                          # img1 window
                      halo_top, main, halo_bot],                         # img2 window
            out_specs=pl.BlockSpec((3, TH, W), lambda i: (0, i, 0)),
            compiler_params=cparams,
        )(av, bh, img1, img1, img1, img2, img2, img2)

    # TODO(synk): heights not divisible by 8 fall back to a single whole-image tile.
    av = jnp.asarray(_build_av_full(H))
    full = lambda *shape: pl.BlockSpec(shape, lambda i, _s=shape: (0,) * len(_s))
    return pl.pallas_call(
        _fused_single_kernel,
        grid=(1,),
        out_shape=jax.ShapeDtypeStruct((3, H, W), jnp.float32),
        in_specs=[full(H, H), full(W, W), full(3, H, W), full(3, H, W)],
        out_specs=full(3, H, W),
        compiler_params=cparams,
    )(av, bh, img1, img2)


@jax.jit
def hsv_score(img1_hwc, img2_hwc):
    """Mirrors HSV_Score.forward: /255, HWC->CHW, kornia rgb_to_hsv abs-diff
    (h normalized by 2*3.1416), then gaussian_filter(sigma=2, reflect) per map."""
    img1 = jnp.transpose(img1_hwc.astype(jnp.float32), (2, 0, 1))   # (3,H,W), 0..255
    img2 = jnp.transpose(img2_hwc.astype(jnp.float32), (2, 0, 1))
    blurred = _fused_hsv_blur(img1, img2)
    return blurred[0], blurred[1], blurred[2]   # h_diff, s_diff, v_diff, each (H, W)


@jax.jit
def _reference_hsv_score(img1_hwc, img2_hwc):
    """Pure-JAX reference (pad-symmetric + 17-tap shift/add blur) for self-checking."""
    img1 = jnp.transpose(img1_hwc.astype(jnp.float32) / 255.0, (2, 0, 1))
    img2 = jnp.transpose(img2_hwc.astype(jnp.float32) / 255.0, (2, 0, 1))
    h1, s1, v1 = _rgb_to_hsv(img1[0], img1[1], img1[2])
    h2, s2, v2 = _rgb_to_hsv(img2[0], img2[1], img2[2])
    d = jnp.stack([jnp.abs(h1 - h2) / _H_NORM, jnp.abs(s1 - s2), jnp.abs(v1 - v2)])
    _, H, W = d.shape
    xp = jnp.pad(d, ((0, 0), (_RADIUS, _RADIUS), (_RADIUS, _RADIUS)), mode="symmetric")
    w = [float(x) for x in _WEIGHTS]
    row = sum(w[k] * xp[:, :, k:k + W] for k in range(_KSIZE))
    out = sum(w[k] * row[:, k:k + H, :] for k in range(_KSIZE))
    return out


if __name__ == "__main__":
    root = jax.random.PRNGKey(0)
    # (16,16): single-tile path;  (320,192): 2-row-tile path exercising the halo specs.
    for (H, W) in ((16, 16), (320, 192)):
        k1, k2 = jax.random.split(jax.random.fold_in(root, H * 1000 + W))
        img1 = jax.random.uniform(k1, (H, W, 3), jnp.float32, 0.0, 255.0)
        img2 = jax.random.uniform(k2, (H, W, 3), jnp.float32, 0.0, 255.0)

        h_d, s_d, v_d = hsv_score(img1, img2)
        jax.block_until_ready((h_d, s_d, v_d))
        assert h_d.shape == (H, W) and s_d.shape == (H, W) and v_d.shape == (H, W)

        ref = np.asarray(_reference_hsv_score(img1, img2))
        got = np.stack([np.asarray(h_d), np.asarray(s_d), np.asarray(v_d)])
        np.testing.assert_allclose(got, ref, atol=2e-2, rtol=0.0)

    print("KERNEL_OK")
</pallas_src>

<mosaic_0001>
module attributes {stable_mosaic.version = 11 : i64} {
  func.func @_fused_tiled_kernel(%arg0: i32, %arg1: memref<1x16x32xf32, #tpu.memory_space<vmem>>, %arg2: memref<16x16xf32, #tpu.memory_space<vmem>>, %arg3: memref<3x8x16xf32, #tpu.memory_space<vmem>>, %arg4: memref<3x16x16xf32, #tpu.memory_space<vmem>>, %arg5: memref<3x8x16xf32, #tpu.memory_space<vmem>>, %arg6: memref<3x8x16xf32, #tpu.memory_space<vmem>>, %arg7: memref<3x16x16xf32, #tpu.memory_space<vmem>>, %arg8: memref<3x8x16xf32, #tpu.memory_space<vmem>>, %arg9: memref<3x16x16xf32, #tpu.memory_space<vmem>>) attributes {dimension_semantics = [#tpu.dimension_semantics<parallel>], iteration_bounds = array<i64: 1>, scalar_prefetch = 0 : i64, scratch_operands = 0 : i64, tpu.core_type = #tpu.core_type<tc>, window_params = [{transform_indices = @transform_0, window_bounds = array<i64: 1, 16, 32>}, {pipeline_mode = #tpu.pipeline_mode<synchronous>, transform_indices = @transform_1, window_bounds = array<i64: 16, 16>}, {transform_indices = @transform_2, window_bounds = array<i64: 3, 8, 16>}, {transform_indices = @transform_3, window_bounds = array<i64: 3, 16, 16>}, {transform_indices = @transform_4, window_bounds = array<i64: 3, 8, 16>}, {transform_indices = @transform_5, window_bounds = array<i64: 3, 8, 16>}, {transform_indices = @transform_6, window_bounds = array<i64: 3, 16, 16>}, {transform_indices = @transform_7, window_bounds = array<i64: 3, 8, 16>}, {transform_indices = @transform_8, window_bounds = array<i64: 3, 16, 16>}]} {
    %c0 = arith.constant 0 : index
    %c0_0 = arith.constant 0 : index
    %c0_1 = arith.constant 0 : index
    %0 = vector.load %arg3[%c0, %c0_0, %c0_1] : memref<3x8x16xf32, #tpu.memory_space<vmem>>, vector<3x8x16xf32>
    %c0_2 = arith.constant 0 : index
    %c0_3 = arith.constant 0 : index
    %c0_4 = arith.constant 0 : index
    %1 = vector.load %arg4[%c0_2, %c0_3, %c0_4] : memref<3x16x16xf32, #tpu.memory_space<vmem>>, vector<3x16x16xf32>
    %c0_5 = arith.constant 0 : index
    %c0_6 = arith.constant 0 : index
    %c0_7 = arith.constant 0 : index
    %2 = vector.load %arg5[%c0_5, %c0_6, %c0_7] : memref<3x8x16xf32, #tpu.memory_space<vmem>>, vector<3x8x16xf32>
    %3 = tpu.concatenate %0, %1, %2 in 1 : vector<3x8x16xf32>, vector<3x16x16xf32>, vector<3x8x16xf32> -> vector<3x32x16xf32>
    %c0_8 = arith.constant 0 : index
    %c0_9 = arith.constant 0 : index
    %c0_10 = arith.constant 0 : index
    %4 = vector.load %arg6[%c0_8, %c0_9, %c0_10] : memref<3x8x16xf32, #tpu.memory_space<vmem>>, vector<3x8x16xf32>
    %c0_11 = arith.constant 0 : index
    %c0_12 = arith.constant 0 : index
    %c0_13 = arith.constant 0 : index
    %5 = vector.load %arg7[%c0_11, %c0_12, %c0_13] : memref<3x16x16xf32, #tpu.memory_space<vmem>>, vector<3x16x16xf32>
    %c0_14 = arith.constant 0 : index
    %c0_15 = arith.constant 0 : index
    %c0_16 = arith.constant 0 : index
    %6 = vector.load %arg8[%c0_14, %c0_15, %c0_16] : memref<3x8x16xf32, #tpu.memory_space<vmem>>, vector<3x8x16xf32>
    %7 = tpu.concatenate %4, %5, %6 in 1 : vector<3x8x16xf32>, vector<3x16x16xf32>, vector<3x8x16xf32> -> vector<3x32x16xf32>
    %8 = vector.extract_strided_slice %3 {offsets = [0, 0, 0], sizes = [1, 32, 16], strides = [1, 1, 1]} : vector<3x32x16xf32> to vector<1x32x16xf32>
    %9 = vector.shape_cast %8 : vector<1x32x16xf32> to vector<32x16xf32>
    %cst = arith.constant 0.00392156886 : f32
    %10 = vector.broadcast %cst : f32 to vector<32x16xf32>
    %11 = arith.mulf %9, %10 : vector<32x16xf32>
    %12 = vector.extract_strided_slice %3 {offsets = [1, 0, 0], sizes = [1, 32, 16], strides = [1, 1, 1]} : vector<3x32x16xf32> to vector<1x32x16xf32>
    %13 = vector.shape_cast %12 : vector<1x32x16xf32> to vector<32x16xf32>
    %cst_17 = arith.constant 0.00392156886 : f32
    %14 = vector.broadcast %cst_17 : f32 to vector<32x16xf32>
    %15 = arith.mulf %13, %14 : vector<32x16xf32>
    %16 = vector.extract_strided_slice %3 {offsets = [2, 0, 0], sizes = [1, 32, 16], strides = [1, 1, 1]} : vector<3x32x16xf32> to vector<1x32x16xf32>
    %17 = vector.shape_cast %16 : vector<1x32x16xf32> to vector<32x16xf32>
    %cst_18 = arith.constant 0.00392156886 : f32
    %18 = vector.broadcast %cst_18 : f32 to vector<32x16xf32>
    %19 = arith.mulf %17, %18 : vector<32x16xf32>
    %20 = arith.maximumf %11, %15 : vector<32x16xf32>
    %21 = arith.maximumf %20, %19 : vector<32x16xf32>
    %22 = arith.minimumf %11, %15 : vector<32x16xf32>
    %23 = arith.minimumf %22, %19 : vector<32x16xf32>
    %24 = arith.subf %21, %23 : vector<32x16xf32>
    %cst_19 = arith.constant 9.99999993E-9 : f32
    %25 = vector.broadcast %cst_19 : f32 to vector<32x16xf32>
    %26 = arith.addf %21, %25 : vector<32x16xf32>
    %27 = arith.divf %24, %26 : vector<32x16xf32>
    %cst_20 = arith.constant 0.000000e+00 : f32
    %28 = vector.broadcast %cst_20 : f32 to vector<32x16xf32>
    %29 = arith.cmpf oeq, %24, %28 : vector<32x16xf32>
    %cst_21 = arith.constant 1.000000e+00 : f32
    %30 = vector.broadcast %cst_21 : f32 to vector<32x16xf32>
    %31 = arith.select %29, %30, %24 : vector<32x16xi1>, vector<32x16xf32>
    %32 = arith.subf %21, %11 : vector<32x16xf32>
    %33 = arith.subf %21, %15 : vector<32x16xf32>
    %34 = arith.subf %21, %19 : vector<32x16xf32>
    %35 = arith.subf %34, %33 : vector<32x16xf32>
    %36 = arith.subf %32, %34 : vector<32x16xf32>
    %cst_22 = arith.constant 2.000000e+00 : f32
    %37 = vector.broadcast %cst_22 : f32 to vector<32x16xf32>
    %38 = arith.mulf %37, %24 : vector<32x16xf32>
    %39 = arith.addf %36, %38 : vector<32x16xf32>
    %40 = arith.subf %33, %32 : vector<32x16xf32>
    %cst_23 = arith.constant 4.000000e+00 : f32
    %41 = vector.broadcast %cst_23 : f32 to vector<32x16xf32>
    %42 = arith.mulf %41, %24 : vector<32x16xf32>
    %43 = arith.addf %40, %42 : vector<32x16xf32>
    %44 = arith.cmpf oeq, %21, %11 : vector<32x16xf32>
    %45 = arith.cmpf oeq, %21, %15 : vector<32x16xf32>
    %46 = arith.select %45, %39, %43 : vector<32x16xi1>, vector<32x16xf32>
    %47 = arith.select %44, %35, %46 : vector<32x16xi1>, vector<32x16xf32>
    %48 = arith.divf %47, %31 : vector<32x16xf32>
    %cst_24 = arith.constant 6.000000e+00 : f32
    %49 = vector.broadcast %cst_24 : f32 to vector<32x16xf32>
    %50 = arith.divf %48, %49 : vector<32x16xf32>
    %cst_25 = arith.constant 1.000000e+00 : f32
    %51 = vector.broadcast %cst_25 : f32 to vector<32x16xf32>
    %52 = arith.remf %50, %51 : vector<32x16xf32>
    %cst_26 = arith.constant 0.000000e+00 : f32
    %53 = vector.broadcast %cst_26 : f32 to vector<32x16xf32>
    %54 = arith.cmpf one, %52, %53 : vector<32x16xf32>
    %cst_27 = arith.constant 0.000000e+00 : f32
    %55 = vector.broadcast %cst_27 : f32 to vector<32x16xf32>
    %56 = arith.cmpf olt, %52, %55 : vector<32x16xf32>
    %cst_28 = arith.constant 0.000000e+00 : f32
    %57 = arith.cmpf olt, %cst_25, %cst_28 : f32
    %58 = vector.broadcast %57 : i1 to vector<32x16xi1>
    %59 = vector.broadcast %58 : vector<32x16xi1> to vector<32x16xi1>
    %60 = arith.xori %56, %59 : vector<32x16xi1>
    %61 = arith.andi %60, %54 : vector<32x16xi1>
    %62 = vector.broadcast %cst_25 : f32 to vector<32x16xf32>
    %63 = arith.addf %52, %62 : vector<32x16xf32>
    %64 = arith.select %61, %63, %52 : vector<32x16xi1>, vector<32x16xf32>
    %cst_29 = arith.constant 6.28318548 : f32
    %65 = vector.broadcast %cst_29 : f32 to vector<32x16xf32>
    %66 = arith.mulf %65, %64 : vector<32x16xf32>
    %67 = vector.extract_strided_slice %7 {offsets = [0, 0, 0], sizes = [1, 32, 16], strides = [1, 1, 1]} : vector<3x32x16xf32> to vector<1x32x16xf32>
    %68 = vector.shape_cast %67 : vector<1x32x16xf32> to vector<32x16xf32>
    %cst_30 = arith.constant 0.00392156886 : f32
    %69 = vector.broadcast %cst_30 : f32 to vector<32x16xf32>
    %70 = arith.mulf %68, %69 : vector<32x16xf32>
    %71 = vector.extract_strided_slice %7 {offsets = [1, 0, 0], sizes = [1, 32, 16], strides = [1, 1, 1]} : vector<3x32x16xf32> to vector<1x32x16xf32>
    %72 = vector.shape_cast %71 : vector<1x32x16xf32> to vector<32x16xf32>
    %cst_31 = arith.constant 0.00392156886 : f32
    %73 = vector.broadcast %cst_31 : f32 to vector<32x16xf32>
    %74 = arith.mulf %72, %73 : vector<32x16xf32>
    %75 = vector.extract_strided_slice %7 {offsets = [2, 0, 0], sizes = [1, 32, 16], strides = [1, 1, 1]} : vector<3x32x16xf32> to vector<1x32x16xf32>
    %76 = vector.shape_cast %75 : vector<1x32x16xf32> to vector<32x16xf32>
    %cst_32 = arith.constant 0.00392156886 : f32
    %77 = vector.broadcast %cst_32 : f32 to vector<32x16xf32>
    %78 = arith.mulf %76, %77 : vector<32x16xf32>
    %79 = arith.maximumf %70, %74 : vector<32x16xf32>
    %80 = arith.maximumf %79, %78 : vector<32x16xf32>
    %81 = arith.minimumf %70, %74 : vector<32x16xf32>
    %82 = arith.minimumf %81, %78 : vector<32x16xf32>
    %83 = arith.subf %80, %82 : vector<32x16xf32>
    %cst_33 = arith.constant 9.99999993E-9 : f32
    %84 = vector.broadcast %cst_33 : f32 to vector<32x16xf32>
    %85 = arith.addf %80, %84 : vector<32x16xf32>
    %86 = arith.divf %83, %85 : vector<32x16xf32>
    %cst_34 = arith.constant 0.000000e+00 : f32
    %87 = vector.broadcast %cst_34 : f32 to vector<32x16xf32>
    %88 = arith.cmpf oeq, %83, %87 : vector<32x16xf32>
    %cst_35 = arith.constant 1.000000e+00 : f32
    %89 = vector.broadcast %cst_35 : f32 to vector<32x16xf32>
    %90 = arith.select %88, %89, %83 : vector<32x16xi1>, vector<32x16xf32>
    %91 = arith.subf %80, %70 : vector<32x16xf32>
    %92 = arith.subf %80, %74 : vector<32x16xf32>
    %93 = arith.subf %80, %78 : vector<32x16xf32>
    %94 = arith.subf %93, %92 : vector<32x16xf32>
    %95 = arith.subf %91, %93 : vector<32x16xf32>
    %cst_36 = arith.constant 2.000000e+00 : f32
    %96 = vector.broadcast %cst_36 : f32 to vector<32x16xf32>
    %97 = arith.mulf %96, %83 : vector<32x16xf32>
    %98 = arith.addf %95, %97 : vector<32x16xf32>
    %99 = arith.subf %92, %91 : vector<32x16xf32>
    %cst_37 = arith.constant 4.000000e+00 : f32
    %100 = vector.broadcast %cst_37 : f32 to vector<32x16xf32>
    %101 = arith.mulf %100, %83 : vector<32x16xf32>
    %102 = arith.addf %99, %101 : vector<32x16xf32>
    %103 = arith.cmpf oeq, %80, %70 : vector<32x16xf32>
    %104 = arith.cmpf oeq, %80, %74 : vector<32x16xf32>
    %105 = arith.select %104, %98, %102 : vector<32x16xi1>, vector<32x16xf32>
    %106 = arith.select %103, %94, %105 : vector<32x16xi1>, vector<32x16xf32>
    %107 = arith.divf %106, %90 : vector<32x16xf32>
    %cst_38 = arith.constant 6.000000e+00 : f32
    %108 = vector.broadcast %cst_38 : f32 to vector<32x16xf32>
    %109 = arith.divf %107, %108 : vector<32x16xf32>
    %cst_39 = arith.constant 1.000000e+00 : f32
    %110 = vector.broadcast %cst_39 : f32 to vector<32x16xf32>
    %111 = arith.remf %109, %110 : vector<32x16xf32>
    %cst_40 = arith.constant 0.000000e+00 : f32
    %112 = vector.broadcast %cst_40 : f32 to vector<32x16xf32>
    %113 = arith.cmpf one, %111, %112 : vector<32x16xf32>
    %cst_41 = arith.constant 0.000000e+00 : f32
    %114 = vector.broadcast %cst_41 : f32 to vector<32x16xf32>
    %115 = arith.cmpf olt, %111, %114 : vector<32x16xf32>
    %cst_42 = arith.constant 0.000000e+00 : f32
    %116 = arith.cmpf olt, %cst_39, %cst_42 : f32
    %117 = vector.broadcast %116 : i1 to vector<32x16xi1>
    %118 = vector.broadcast %117 : vector<32x16xi1> to vector<32x16xi1>
    %119 = arith.xori %115, %118 : vector<32x16xi1>
    %120 = arith.andi %119, %113 : vector<32x16xi1>
    %121 = vector.broadcast %cst_39 : f32 to vector<32x16xf32>
    %122 = arith.addf %111, %121 : vector<32x16xf32>
    %123 = arith.select %120, %122, %111 : vector<32x16xi1>, vector<32x16xf32>
    %cst_43 = arith.constant 6.28318548 : f32
    %124 = vector.broadcast %cst_43 : f32 to vector<32x16xf32>
    %125 = arith.mulf %124, %123 : vector<32x16xf32>
    %126 = arith.subf %66, %125 : vector<32x16xf32>
    %127 = math.absf %126 : vector<32x16xf32>
    %cst_44 = arith.constant 0.159154564 : f32
    %128 = vector.broadcast %cst_44 : f32 to vector<32x16xf32>
    %129 = arith.mulf %127, %128 : vector<32x16xf32>
    %130 = arith.subf %27, %86 : vector<32x16xf32>
    %131 = math.absf %130 : vector<32x16xf32>
    %132 = arith.subf %21, %80 : vector<32x16xf32>
    %133 = math.absf %132 : vector<32x16xf32>
    %c0_45 = arith.constant 0 : index
    %c0_46 = arith.constant 0 : index
    %c0_47 = arith.constant 0 : index
    %134 = vector.load %arg1[%c0_45, %c0_46, %c0_47] : memref<1x16x32xf32, #tpu.memory_space<vmem>>, vector<1x16x32xf32>
    %135 = vector.shape_cast %134 : vector<1x16x32xf32> to vector<16x32xf32>
    %c0_48 = arith.constant 0 : index
    %c0_49 = arith.constant 0 : index
    %136 = vector.load %arg2[%c0_48, %c0_49] : memref<16x16xf32, #tpu.memory_space<vmem>>, vector<16x16xf32>
    %cst_50 = arith.constant dense<0.000000e+00> : vector<16x16xf32>
    %137 = tpu.matmul %135, %129, %cst_50 {dimension_numbers = #tpu.dot_dimension_numbers<[1], [0], [0], [1], [0, 0, 1, 1], [], []>, precision = #tpu.contract_precision<fp32>} : vector<16x32xf32>, vector<32x16xf32>, vector<16x16xf32> -> vector<16x16xf32>
    %cst_51 = arith.constant dense<0.000000e+00> : vector<16x16xf32>
    %138 = tpu.matmul %137, %136, %cst_51 {dimension_numbers = #tpu.dot_dimension_numbers<[1], [0], [0], [1], [0, 0, 1, 1], [], []>, precision = #tpu.contract_precision<fp32>} : vector<16x16xf32>, vector<16x16xf32>, vector<16x16xf32> -> vector<16x16xf32>
    %c0_52 = arith.constant 0 : index
    %c0_53 = arith.constant 0 : index
    %c0_54 = arith.constant 0 : index
    %139 = vector.load %arg9[%c0_52, %c0_53, %c0_54] : memref<3x16x16xf32, #tpu.memory_space<vmem>>, vector<1x16x16xf32>
    %140 = vector.shape_cast %139 : vector<1x16x16xf32> to vector<16x16xf32>
    %141 = vector.shape_cast %138 : vector<16x16xf32> to vector<1x16x16xf32>
    tpu.vector_store %arg9[%c0_52, %c0_53, %c0_54], %141 {strides = array<i32>} : memref<3x16x16xf32, #tpu.memory_space<vmem>>, vector<1x16x16xf32>,
    %cst_55 = arith.constant dense<0.000000e+00> : vector<16x16xf32>
    %142 = tpu.matmul %135, %131, %cst_55 {dimension_numbers = #tpu.dot_dimension_numbers<[1], [0], [0], [1], [0, 0, 1, 1], [], []>, precision = #tpu.contract_precision<fp32>} : vector<16x32xf32>, vector<32x16xf32>, vector<16x16xf32> -> vector<16x16xf32>
    %cst_56 = arith.constant dense<0.000000e+00> : vector<16x16xf32>
    %143 = tpu.matmul %142, %136, %cst_56 {dimension_numbers = #tpu.dot_dimension_numbers<[1], [0], [0], [1], [0, 0, 1, 1], [], []>, precision = #tpu.contract_precision<fp32>} : vector<16x16xf32>, vector<16x16xf32>, vector<16x16xf32> -> vector<16x16xf32>
    %c1 = arith.constant 1 : index
    %c0_57 = arith.constant 0 : index
    %c0_58 = arith.constant 0 : index
    %144 = vector.load %arg9[%c1, %c0_57, %c0_58] : memref<3x16x16xf32, #tpu.memory_space<vmem>>, vector<1x16x16xf32>
    %145 = vector.shape_cast %144 : vector<1x16x16xf32> to vector<16x16xf32>
    %146 = vector.shape_cast %143 : vector<16x16xf32> to vector<1x16x16xf32>
    tpu.vector_store %arg9[%c1, %c0_57, %c0_58], %146 {strides = array<i32>} : memref<3x16x16xf32, #tpu.memory_space<vmem>>, vector<1x16x16xf32>,
    %cst_59 = arith.constant dense<0.000000e+00> : vector<16x16xf32>
    %147 = tpu.matmul %135, %133, %cst_59 {dimension_numbers = #tpu.dot_dimension_numbers<[1], [0], [0], [1], [0, 0, 1, 1], [], []>, precision = #tpu.contract_precision<fp32>} : vector<16x32xf32>, vector<32x16xf32>, vector<16x16xf32> -> vector<16x16xf32>
    %cst_60 = arith.constant dense<0.000000e+00> : vector<16x16xf32>
    %148 = tpu.matmul %147, %136, %cst_60 {dimension_numbers = #tpu.dot_dimension_numbers<[1], [0], [0], [1], [0, 0, 1, 1], [], []>, precision = #tpu.contract_precision<fp32>} : vector<16x16xf32>, vector<16x16xf32>, vector<16x16xf32> -> vector<16x16xf32>
    %c2 = arith.constant 2 : index
    %c0_61 = arith.constant 0 : index
    %c0_62 = arith.constant 0 : index
    %149 = vector.load %arg9[%c2, %c0_61, %c0_62] : memref<3x16x16xf32, #tpu.memory_space<vmem>>, vector<1x16x16xf32>
    %150 = vector.shape_cast %149 : vector<1x16x16xf32> to vector<16x16xf32>
    %151 = vector.shape_cast %148 : vector<16x16xf32> to vector<1x16x16xf32>
    tpu.vector_store %arg9[%c2, %c0_61, %c0_62], %151 {strides = array<i32>} : memref<3x16x16xf32, #tpu.memory_space<vmem>>, vector<1x16x16xf32>,
    return
  }
  func.func @transform_0(%arg0: i32) -> (i32, i32, i32) {
    %c0_i32 = arith.constant 0 : i32
    %c0_i32_0 = arith.constant 0 : i32
    %c0_i32_1 = arith.constant 0 : i32
    return %arg0, %c0_i32, %c0_i32_0 : i32, i32, i32
  }
  func.func @transform_1(%arg0: i32) -> (i32, i32) {
    %c0_i32 = arith.constant 0 : i32
    %c0_i32_0 = arith.constant 0 : i32
    %c0_i32_1 = arith.constant 0 : i32
    return %c0_i32, %c0_i32_0 : i32, i32
  }
  func.func @transform_2(%arg0: i32) -> (i32, i32, i32) {
    %c2_i32 = arith.constant 2 : i32
    %0 = arith.muli %arg0, %c2_i32 : i32
    %c1_i32 = arith.constant 1 : i32
    %1 = arith.subi %0, %c1_i32 : i32
    %c0_i32 = arith.constant 0 : i32
    %2 = arith.maxsi %1, %c0_i32 : i32
    %c0_i32_0 = arith.constant 0 : i32
    %c0_i32_1 = arith.constant 0 : i32
    %c0_i32_2 = arith.constant 0 : i32
    return %c0_i32_0, %2, %c0_i32_1 : i32, i32, i32
  }
  func.func @transform_3(%arg0: i32) -> (i32, i32, i32) {
    %c0_i32 = arith.constant 0 : i32
    %c0_i32_0 = arith.constant 0 : i32
    %c0_i32_1 = arith.constant 0 : i32
    return %c0_i32, %arg0, %c0_i32_0 : i32, i32, i32
  }
  func.func @transform_4(%arg0: i32) -> (i32, i32, i32) {
    %c2_i32 = arith.constant 2 : i32
    %0 = arith.muli %arg0, %c2_i32 : i32
    %c2_i32_0 = arith.constant 2 : i32
    %1 = arith.addi %0, %c2_i32_0 : i32
    %c1_i32 = arith.constant 1 : i32
    %2 = arith.minsi %1, %c1_i32 : i32
    %c0_i32 = arith.constant 0 : i32
    %c0_i32_1 = arith.constant 0 : i32
    %c0_i32_2 = arith.constant 0 : i32
    return %c0_i32, %2, %c0_i32_1 : i32, i32, i32
  }
  func.func @transform_5(%arg0: i32) -> (i32, i32, i32) {
    %c2_i32 = arith.constant 2 : i32
    %0 = arith.muli %arg0, %c2_i32 : i32
    %c1_i32 = arith.constant 1 : i32
    %1 = arith.subi %0, %c1_i32 : i32
    %c0_i32 = arith.constant 0 : i32
    %2 = arith.maxsi %1, %c0_i32 : i32
    %c0_i32_0 = arith.constant 0 : i32
    %c0_i32_1 = arith.constant 0 : i32
    %c0_i32_2 = arith.constant 0 : i32
    return %c0_i32_0, %2, %c0_i32_1 : i32, i32, i32
  }
  func.func @transform_6(%arg0: i32) -> (i32, i32, i32) {
    %c0_i32 = arith.constant 0 : i32
    %c0_i32_0 = arith.constant 0 : i32
    %c0_i32_1 = arith.constant 0 : i32
    return %c0_i32, %arg0, %c0_i32_0 : i32, i32, i32
  }
  func.func @transform_7(%arg0: i32) -> (i32, i32, i32) {
    %c2_i32 = arith.constant 2 : i32
    %0 = arith.muli %arg0, %c2_i32 : i32
    %c2_i32_0 = arith.constant 2 : i32
    %1 = arith.addi %0, %c2_i32_0 : i32
    %c1_i32 = arith.constant 1 : i32
    %2 = arith.minsi %1, %c1_i32 : i32
    %c0_i32 = arith.constant 0 : i32
    %c0_i32_1 = arith.constant 0 : i32
    %c0_i32_2 = arith.constant 0 : i32
    return %c0_i32, %2, %c0_i32_1 : i32, i32, i32
  }
  func.func @transform_8(%arg0: i32) -> (i32, i32, i32) {
    %c0_i32 = arith.constant 0 : i32
    %c0_i32_0 = arith.constant 0 : i32
    %c0_i32_1 = arith.constant 0 : i32
    return %c0_i32, %arg0, %c0_i32_0 : i32, i32, i32
  }
}

</mosaic_0001>

<bundles_post_ra>
// kernel: hsv_score.1
= control target key start
LH: loop header
LB: loop body
LE: loop exit
PB: predicated region body
PF: predicated region fallthrough
CT: control target
= control target key end

     0   :  { %13 = vsyncpa [#allocation3], 0  ;;  %s5473_s0 = inlined_call_operand.hbm [shape: f32[1,16,32], index: 0, kind: input, shape index: {}]   ;;  %s5474_s1 = inlined_call_operand.hbm [shape: f32[16,16], index: 1, kind: input, shape index: {}]   ;;  %s5475_s2 = inlined_call_operand.hbm [shape: f32[3,16,16], index: 2, kind: input, shape index: {}, may-alias: {2,3,4}]   ;;  %s5476_s3 = inlined_call_operand.hbm [shape: f32[3,16,16], index: 3, kind: input, shape index: {}, may-alias: {2,3,4}]   ;;  %s5477_s4 = inlined_call_operand.hbm [shape: f32[3,16,16], index: 4, kind: input, shape index: {}, may-alias: {2,3,4}]   ;;  %s5478_s5 = inlined_call_operand.hbm [shape: f32[3,16,16], index: 5, kind: input, shape index: {}, may-alias: {5,6,7}]   ;;  %s5479_s6 = inlined_call_operand.hbm [shape: f32[3,16,16], index: 6, kind: input, shape index: {}, may-alias: {5,6,7}]   ;;  %s5480_s7 = inlined_call_operand.hbm [shape: f32[3,16,16], index: 7, kind: input, shape index: {}, may-alias: {5,6,7}]   ;;  %s5481_s8 = inlined_call_operand.hbm [shape: f32[3,16,16], index: 8, kind: output, shape index: {}]  }
   0x1   :  { %14 = vsyncpa [#allocation6], 0 }
   0x2   :  { %15 = vsyncpa [#allocation9], 0 }
   0x3   :  { %16 = vsyncpa [#allocation12], 0 }
   0x4   :  { %17 = vsyncpa [#allocation15], 0 }
   0x5   :  { %18 = vsyncpa [#allocation4], 0  ;;  %s4797_s27 = smov [#allocation5]   ;;  %s4798_s29 = smov [#allocation8]  }
   0x6   :  { %s36_s28 = sshll.u32 %s4797_s27, 4  ;;  %s66_s30 = sshll.u32 %s4798_s29, 4  ;;  %s37_s28 = int_to_ptr.vmem [resolvable:$true] %s36_s28  ;;  %s4854_s30 = int_to_ptr.vmem [resolvable:$true] %s66_s30 }
   0x7   :  { %s4581_s11 = scalar_lea.hbm %s5474_s1, 256 }
   0x8   :  { %p4582_p0 = scmp.ne.s32.totalorder %s5474_s1, %s4581_s11  ;;  %p4585_p1 = scmp.lt.u32.totalorder %s4581_s11, %s5474_s1 }
   0xa   :  { %p4587_p2 = pnand %p4585_p1, %p4582_p0 }
   0xc   :  { %4590 = shalt.err (!%p4587_p2)
}
   0xd   :  { %s4591_s16 = scalar_lea.vmem %s37_s28, 256  ;;  %p4596_p4 = scmp.lt.s32.totalorder %s37_s28, %s37_s28 }
   0xe   :  { %p4592_p3 = scmp.ne.s32.totalorder %s37_s28, %s4591_s16  ;;  %p4597_p5 = scmp.lt.s32.totalorder %s4591_s16, %s4591_s16 }
  0x10   :  { %p4598_p6 = por %p4597_p5, %p4596_p4 }
  0x12   :  { %p4599_p7 = pnand %p4598_p6, %p4592_p3 }
  0x14   :  { %4602 = shalt.err (!%p4599_p7)
}
  0x15   :  { %s4799_s17 = smov 128   ;;  %s4800_s18 = smov 8  }
  0x16   :  { %42 = dma.hbm_to_vmem [thread:$0]  %s5474_s1, 256, %s37_s28, [#allocation6], %s4799_s17, %s4799_s17, %s4800_s18  }
  0x17   :  { %s4603_s23 = scalar_lea.hbm %s5476_s3, 768 }
  0x18   :  { %p4604_p8 = scmp.ne.s32.totalorder %s5476_s3, %s4603_s23  ;;  %p4607_p9 = scmp.lt.u32.totalorder %s4603_s23, %s5476_s3 }
  0x1a   :  { %p4609_p10 = pnand %p4607_p9, %p4604_p8 }
  0x1c   :  { %4612 = shalt.err (!%p4609_p10)
}
  0x1d   :  { %s4613_s29 = scalar_lea.vmem %s4854_s30, 768  ;;  %p4618_p12 = scmp.lt.s32.totalorder %s4854_s30, %s4854_s30 }
  0x1e   :  { %p4614_p11 = scmp.ne.s32.totalorder %s4854_s30, %s4613_s29  ;;  %p4619_p13 = scmp.lt.s32.totalorder %s4613_s29, %s4613_s29 }
  0x20   :  { %p4620_p0 = por %p4619_p13, %p4618_p12 }
  0x22   :  { %p4621_p1 = pnand %p4620_p0, %p4614_p11 }
  0x24   :  { %4624 = shalt.err (!%p4621_p1)
}
  0x25   :  { %72 = dma.hbm_to_vmem [thread:$0]  %s5476_s3, 768, %s4854_s30, [#allocation9], %s4799_s17, %s4799_s17, %s4800_s18  }
  0x26   :  { %s4801_s9 = smov [#allocation11]   ;;  %s4802_s11 = smov [#allocation2]  }
  0x27   :  { %s102_s10 = sshll.u32 %s4801_s9, 4  ;;  %s24_s12 = sshll.u32 %s4802_s11, 4  ;;  %s103_s10 = int_to_ptr.vmem [resolvable:$true] %s102_s10  ;;  %s25_s12 = int_to_ptr.vmem [resolvable:$true] %s24_s12 }
  0x28   :  { %s4625_s15 = scalar_lea.hbm %s5478_s5, 384  ;;  %s4627_s22 = scalar_lea.hbm %s5478_s5, 768 }
  0x29   :  { %p4626_p2 = scmp.ne.s32.totalorder %s5478_s5, %s4625_s15  ;;  %p4628_p3 = scmp.lt.u32.totalorder %s4627_s22, %s4625_s15 }
  0x2a   :  { %p4629_p4 = scmp.lt.u32.totalorder %s4625_s15, %s5478_s5 }
  0x2c   :  { %p4630_p5 = por %p4629_p4, %p4628_p3 }
  0x2e   :  { %p4631_p6 = pnand %p4630_p5, %p4626_p2 }
  0x30   :  { %4634 = shalt.err (!%p4631_p6)
}
  0x31   :  { %s4635_s30 = scalar_lea.vmem %s103_s10, 384  ;;  %p4640_p8 = scmp.lt.s32.totalorder %s103_s10, %s103_s10 }
  0x32   :  { %p4636_p7 = scmp.ne.s32.totalorder %s103_s10, %s4635_s30  ;;  %p4641_p9 = scmp.lt.s32.totalorder %s4635_s30, %s4635_s30 }
  0x34   :  { %p4642_p10 = por %p4641_p9, %p4640_p8 }
  0x36   :  { %p4643_p11 = pnand %p4642_p10, %p4636_p7 }
  0x38   :  { %4646 = shalt.err (!%p4643_p11)
}
  0x39   :  { %s4803_s24 = smov 256   ;;  %s4647_s1 = scalar_lea.hbm %s5473_s0, 256 }
  0x3a   :  { %108 = dma.hbm_to_vmem [thread:$0]  %s5478_s5, 384, %s103_s10, [#allocation12], %s4803_s24, %s4799_s17, %s4800_s18  }
  0x3b   :  { %p4648_p12 = scmp.ne.s32.totalorder %s5473_s0, %s4647_s1  ;;  %p4651_p13 = scmp.lt.u32.totalorder %s4647_s1, %s5473_s0 }
  0x3d   :  { %p4653_p0 = pnand %p4651_p13, %p4648_p12 }
  0x3f   :  { %4656 = shalt.err (!%p4653_p0)
}
  0x40   :  { %s4657_s14 = scalar_lea.vmem %s25_s12, 256  ;;  %p4662_p2 = scmp.lt.s32.totalorder %s25_s12, %s25_s12 }
  0x41   :  { %p4658_p1 = scmp.ne.s32.totalorder %s25_s12, %s4657_s14  ;;  %p4663_p3 = scmp.lt.s32.totalorder %s4657_s14, %s4657_s14 }
  0x43   :  { %p4664_p4 = por %p4663_p3, %p4662_p2 }
  0x45   :  { %p4665_p5 = pnand %p4664_p4, %p4658_p1 }
  0x47   :  { %4668 = shalt.err (!%p4665_p5)
}
  0x48   :  { %30 = dma.hbm_to_vmem [thread:$0]  %s5473_s0, 256, %s25_s12, [#allocation3], %s4799_s17, %s4799_s17, %s4800_s18  }
  0x49   :  { %s4804_s15 = smov [#allocation7]   ;;  %s4927_s21 = scalar_lea.hbm %s5477_s4, 128 }
  0x4a   :  { %s54_s16 = sshll.u32 %s4804_s15, 4  ;;  %s4669_s3 = scalar_lea.hbm %s5475_s2, 384  ;;  %s55_s16 = int_to_ptr.vmem [resolvable:$true] %s54_s16 }
  0x4b   :  { %p4670_p6 = scmp.ne.s32.totalorder %s5475_s2, %s4669_s3  ;;  %s4671_s0 = scalar_lea.hbm %s5475_s2, 768 }
  0x4c   :  { %p4672_p7 = scmp.lt.u32.totalorder %s4671_s0, %s4669_s3  ;;  %p4673_p8 = scmp.lt.u32.totalorder %s4669_s3, %s5475_s2 }
  0x4e   :  { %p4674_p9 = por %p4673_p8, %p4672_p7 }
  0x50   :  { %p4675_p10 = pnand %p4674_p9, %p4670_p6 }
  0x52   :  { %4678 = shalt.err (!%p4675_p10)
}
  0x53   :  { %s4679_s1 = scalar_lea.vmem %s55_s16, 384  ;;  %p4684_p12 = scmp.lt.s32.totalorder %s55_s16, %s55_s16 }
  0x54   :  { %p4680_p11 = scmp.ne.s32.totalorder %s55_s16, %s4679_s1  ;;  %p4685_p13 = scmp.lt.s32.totalorder %s4679_s1, %s4679_s1 }
  0x56   :  { %p4686_p0 = por %p4685_p13, %p4684_p12 }
  0x58   :  { %p4687_p1 = pnand %p4686_p0, %p4680_p11 }
  0x5a   :  { %4690 = shalt.err (!%p4687_p1)
}
  0x5b   :  { %60 = dma.hbm_to_vmem [thread:$0]  %s5475_s2, 384, %s55_s16, [#allocation6], %s4803_s24, %s4799_s17, %s4800_s18  }
  0x5c   :  { %s4805_s11 = smov [#allocation10]   ;;  %s4806_s14 = smov [#allocation13]  }
  0x5d   :  { %s84_s13 = sshll.u32 %s4805_s11, 4  ;;  %s114_s5 = sshll.u32 %s4806_s14, 4  ;;  %s85_s13 = int_to_ptr.vmem [resolvable:$true] %s84_s13  ;;  %s115_s5 = int_to_ptr.vmem [resolvable:$true] %s114_s5 }
  0x5e   :  { %s4715_s19 = scalar_lea.hbm %s5477_s4, 512  ;;  %s4693_s23 = scalar_lea.hbm %s5477_s4, 768 }
  0x5f   :  { %p4692_p2 = scmp.ne.s32.totalorder %s4927_s21, %s4715_s19  ;;  %p4694_p3 = scmp.lt.u32.totalorder %s4927_s21, %s5477_s4 }
  0x60   :  { %p4695_p4 = scmp.lt.u32.totalorder %s4693_s23, %s4715_s19  ;;  %p4697_p6 = scmp.lt.u32.totalorder %s4715_s19, %s4927_s21 }
  0x62   :  { %p4696_p5 = por %p4695_p4, %p4694_p3 }
  0x64   :  { %p4698_p7 = por %p4697_p6, %p4696_p5 }
  0x66   :  { %p4699_p8 = pnand %p4698_p7, %p4692_p2 }
  0x68   :  { %4702 = shalt.err (!%p4699_p8)
}
  0x69   :  { %s4703_s2 = scalar_lea.vmem %s85_s13, 384  ;;  %p4708_p10 = scmp.lt.s32.totalorder %s85_s13, %s85_s13 }
  0x6a   :  { %p4704_p9 = scmp.ne.s32.totalorder %s85_s13, %s4703_s2  ;;  %p4709_p11 = scmp.lt.s32.totalorder %s4703_s2, %s4703_s2 }
  0x6c   :  { %p4710_p12 = por %p4709_p11, %p4708_p10 }
  0x6e   :  { %p4711_p13 = pnand %p4710_p12, %p4704_p9 }
  0x70   :  { %4714 = shalt.err (!%p4711_p13)
}
  0x71   :  { %90 = dma.hbm_to_vmem [thread:$0]  %s4927_s21, 384, %s85_s13, [#allocation9], %s4803_s24, %s4799_s17, %s4800_s18  }
  0x72   :  { %s4716_s25 = scalar_lea.hbm %s5479_s6, 768 }
  0x73   :  { %p4717_p0 = scmp.ne.s32.totalorder %s5479_s6, %s4716_s25  ;;  %p4720_p1 = scmp.lt.u32.totalorder %s4716_s25, %s5479_s6 }
  0x75   :  { %p4722_p2 = pnand %p4720_p1, %p4717_p0 }
  0x77   :  { %4725 = shalt.err (!%p4722_p2)
}
  0x78   :  { %s4726_s29 = scalar_lea.vmem %s115_s5, 768  ;;  %p4731_p4 = scmp.lt.s32.totalorder %s115_s5, %s115_s5 }
  0x79   :  { %p4727_p3 = scmp.ne.s32.totalorder %s115_s5, %s4726_s29  ;;  %p4732_p5 = scmp.lt.s32.totalorder %s4726_s29, %s4726_s29 }
  0x7b   :  { %p4733_p6 = por %p4732_p5, %p4731_p4 }
  0x7d   :  { %p4734_p7 = pnand %p4733_p6, %p4727_p3 }
  0x7f   :  { %4737 = shalt.err (!%p4734_p7)
}
  0x80   :  { %120 = dma.hbm_to_vmem [thread:$0]  %s5479_s6, 768, %s115_s5, [#allocation12], %s4799_s17, %s4799_s17, %s4800_s18  }
  0x81   :  { %s131_s11 = scalar_lea.hbm %s5480_s7, 128  ;;  %s4807_s13 = smov [#allocation14]  }
  0x82   :  { %s132_s14 = sshll.u32 %s4807_s13, 4  ;;  %s4762_s19 = scalar_lea.hbm %s5480_s7, 512  ;;  %s133_s14 = int_to_ptr.vmem [resolvable:$true] %s132_s14 }
  0x83   :  { %p4739_p8 = scmp.ne.s32.totalorder %s131_s11, %s4762_s19  ;;  %s4740_s23 = scalar_lea.hbm %s5480_s7, 768 }
  0x84   :  { %p4741_p9 = scmp.lt.u32.totalorder %s131_s11, %s5480_s7  ;;  %p4742_p10 = scmp.lt.u32.totalorder %s4740_s23, %s4762_s19 }
  0x85   :  { %p4744_p12 = scmp.lt.u32.totalorder %s4762_s19, %s131_s11 }
  0x86   :  { %p4743_p11 = por %p4742_p10, %p4741_p9 }
  0x88   :  { %p4745_p13 = por %p4744_p12, %p4743_p11 }
  0x8a   :  { %p4746_p0 = pnand %p4745_p13, %p4739_p8 }
  0x8c   :  { %4749 = shalt.err (!%p4746_p0)
}
  0x8d   :  { %s4750_s6 = scalar_lea.vmem %s133_s14, 384  ;;  %p4755_p2 = scmp.lt.s32.totalorder %s133_s14, %s133_s14 }
  0x8e   :  { %p4751_p1 = scmp.ne.s32.totalorder %s133_s14, %s4750_s6  ;;  %p4756_p3 = scmp.lt.s32.totalorder %s4750_s6, %s4750_s6 }
  0x90   :  { %p4757_p4 = por %p4756_p3, %p4755_p2 }
  0x92   :  { %p4758_p5 = pnand %p4757_p4, %p4751_p1 }
  0x94   :  { %4761 = shalt.err (!%p4758_p5)
}
  0x95   :  { %138 = dma.hbm_to_vmem [thread:$0]  %s131_s11, 384, %s133_s14, [#allocation15], %s4803_s24, %s4799_s17, %s4800_s18  }
  0x96   :  { %4785 = dma.done.wait [#allocation3], 256  }
  0x97   :  { %4786 = vsyncadd [#allocation3], 4294967040 }
  0x98   :  { %4787 = dma.done.wait [#allocation6], 640  }
  0x99   :  { %4788 = vsyncadd [#allocation6], 4294966656 }
  0x9a   :  { %4789 = dma.done.wait [#allocation9], 1152  }
  0x9b   :  { %4790 = vsyncadd [#allocation9], 4294966144 }
  0x9c   :  { %4791 = dma.done.wait [#allocation12], 1152  }
  0x9d   :  { %4792 = vsyncadd [#allocation12], 4294966144 }
  0x9e   :  { %4793 = dma.done.wait [#allocation15], 384  }
  0x9f   :  { %4794 = vsyncadd [#allocation15], 4294966912  ;;  %v179_v0 = vld [vmem:[#allocation7] sm:$0xff]  ;;  %v180_v1 = vld [vmem:[#allocation7 + $0x8] sm:$0xff]  ;;  %s4808_s7 = smov [#allocation16]  }
  0xa0   :  { %v181_v2 = vld [vmem:[#allocation7 + $0x10] sm:$0xff]  ;;  %v182_v3 = vld [vmem:[#allocation8] sm:$0xff]  ;;  %v184_v4 = vld [vmem:[#allocation8 + $0x10] sm:$0xff]  ;;  %v4993_v6 = vmul.f32 0.003921569, %v179_v0  ;;  %s3733_s24 = sshll.u32 %s4808_s7, 4  ;;  %s3734_s24 = int_to_ptr.vmem [resolvable:$true] %s3733_s24 }
  0xa1   :  { %v186_v5 = vld [vmem:[#allocation8 + $0x20] sm:$0xff]  ;;  %v191_v7 = vld [vmem:[#allocation11] sm:$0xff]  ;;  %v4995_v8 = vmul.f32 0.003921569, %v182_v3  ;;  %v192_v9 = vld [vmem:[#allocation11 + $0x8] sm:$0xff]  ;;  %s4763_s5 = scalar_lea.vmem %s3734_s24, 768  ;;  %p4768_p7 = scmp.lt.s32.totalorder %s3734_s24, %s3734_s24 }
  0xa2   :  { %v194_v10 = vld [vmem:[#allocation13] sm:$0xff]  ;;  %v196_v11 = vld [vmem:[#allocation13 + $0x10] sm:$0xff]  ;;  %v207_v12 = vmul.f32 0.003921569, %v180_v1  ;;  %v208_v13 = vmul.f32 0.003921569, %v184_v4  ;;  %p4764_p6 = scmp.ne.s32.totalorder %s3734_s24, %s4763_s5  ;;  %p4769_p8 = scmp.lt.s32.totalorder %s4763_s5, %s4763_s5 }
  0xa3   :  { %v211_v14 = vmul.f32 0.003921569, %v181_v2  ;;  %v212_v15 = vmul.f32 0.003921569, %v186_v5  ;;  %v193_v16 = vld [vmem:[#allocation11 + $0x10] sm:$0xff]  ;;  %v198_v17 = vld [vmem:[#allocation13 + $0x20] sm:$0xff] }
  0xa4   :  { %v215_v18 = vmax.f32 %v4993_v6, %v207_v12  ;;  %v223_v19 = vmin.f32 %v4993_v6, %v207_v12  ;;  %v216_v20 = vmax.f32 %v4995_v8, %v208_v13  ;;  %v224_v21 = vmin.f32 %v4995_v8, %v208_v13  ;;  %p4770_p9 = por %p4769_p8, %p4768_p7 }
  0xa5   :  { %v5001_v22 = vmul.f32 0.003921569, %v191_v7  ;;  %v5003_v23 = vmul.f32 0.003921569, %v194_v10  ;;  %v5007_v26 = vmul.f32 0.003921569, %v192_v9 }
  0xa6   :  { %v5005_v24 = vmax.f32 %v215_v18, %v211_v14  ;;  %v227_v25 = vmin.f32 %v223_v19, %v211_v14  ;;  %v5009_v27 = vmul.f32 0.003921569, %v196_v11  ;;  %v5011_v28 = vmax.f32 %v216_v20, %v212_v15  ;;  %p4771_p10 = pnand %p4770_p9, %p4764_p6 }
  0xa7   :  { %v228_v29 = vmin.f32 %v224_v21, %v212_v15  ;;  %v396_v30 = vmul.f32 0.003921569, %v193_v16  ;;  %v397_v31 = vmul.f32 0.003921569, %v198_v17  ;;  %v400_v42 = vmax.f32 %v5001_v22, %v5007_v26  ;;  %v183_v21 = vld [vmem:[#allocation8 + $0x8] sm:$0xff] }
  0xa8   :  { %v5014_v32 = vsub.f32 %v5005_v24, %v227_v25  ;;  %v255_v33 = vsub.f32 %v5005_v24, %v4993_v6  ;;  %v259_v34 = vsub.f32 %v5005_v24, %v207_v12  ;;  %v263_v35 = vsub.f32 %v5005_v24, %v211_v14 }
  0xa9   :  { %v5021_v36 = vsub.f32 %v5011_v28, %v228_v29  ;;  %v256_v37 = vsub.f32 %v5011_v28, %v4995_v8  ;;  %v260_v38 = vsub.f32 %v5011_v28, %v208_v13  ;;  %v264_v39 = vsub.f32 %v5011_v28, %v212_v15 }
  0xaa   :  { %vm247_vm0 = vcmp.eq.f32.partialorder %v5014_v32, 0.0  ;;  %v271_v40 = vsub.f32 %v255_v33, %v263_v35  ;;  %v275_v41 = vmul.f32 2.0, %v5014_v32  ;;  %v267_v43 = vsub.f32 %v263_v35, %v259_v34 }
  0xab   :  { %vm248_vm1 = vcmp.eq.f32.partialorder %v5021_v36, 0.0  ;;  %v272_v44 = vsub.f32 %v256_v37, %v264_v39  ;;  %v401_v45 = vmax.f32 %v5003_v23, %v5009_v27  ;;  %v251_v46 = vsel %vm247_vm0, 1.0, %v5014_v32 }
  0xac   :  { %v252_v47 = vsel %vm248_vm1, 1.0, %v5021_v36  ;;  %v276_v48 = vmul.f32 2.0, %v5021_v36  ;;  %v283_v49 = vsub.f32 %v259_v34, %v255_v33  ;;  %v279_v50 = vadd.f32 %v275_v41, %v271_v40  ;;  %v188_v33 = vld [vmem:[#allocation10] sm:$0xff] }
  0xad   :  { %v284_v51 = vsub.f32 %v260_v38, %v256_v37  ;;  %v287_v52 = vmul.f32 4.0, %v5014_v32  ;;  %v288_v53 = vmul.f32 4.0, %v5021_v36  ;;  %v268_v54 = vsub.f32 %v264_v39, %v260_v38  ;;  %v189_v38 = vld [vmem:[#allocation10 + $0x8] sm:$0xff] }
  0xae   :  { %v280_v55 = vadd.f32 %v276_v48, %v272_v44  ;;  %vm299_vm2 = vcmp.eq.f32.partialorder %v5005_v24, %v207_v12  ;;  %vm300_vm3 = vcmp.eq.f32.partialorder %v5011_v28, %v208_v13  ;;  %4549 = vrcp.f32 %v251_v46 }
  0xaf   :  { %v291_v56 = vadd.f32 %v287_v52, %v283_v49  ;;  %v292_v57 = vadd.f32 %v288_v53, %v284_v51  ;;  %v5041_v58 = vmax.f32 %v400_v42, %v396_v30  ;;  %4551 = vrcp.f32 %v252_v47  ;;  %v187_v42 = vld [vmem:[#allocation8 + $0x28] sm:$0xff] }
  0xb0   :  { %v5043_v59 = vmax.f32 %v401_v45, %v397_v31  ;;  %v408_v60 = vmin.f32 %v5001_v22, %v5007_v26  ;;  %v409_v61 = vmin.f32 %v5003_v23, %v5009_v27  ;;  %vm295_vm4 = vcmp.eq.f32.partialorder %v5005_v24, %v4993_v6 }
  0xb1   :  { %v303_v62 = vsel %vm299_vm2, %v279_v50, %v291_v56  ;;  %v440_v63 = vsub.f32 %v5041_v58, %v5001_v22  ;;  %v5055_v0 = vsub.f32 %v5041_v58, %v5007_v26  ;;  %vm296_vm5 = vcmp.eq.f32.partialorder %v5011_v28, %v4995_v8 }
  0xb2   :  { %v304_v1 = vsel %vm300_vm3, %v280_v55, %v292_v57  ;;  %v412_v2 = vmin.f32 %v408_v60, %v396_v30  ;;  %v413_v3 = vmin.f32 %v409_v61, %v397_v31  ;;  %v441_v4 = vsub.f32 %v5043_v59, %v5003_v23  ;;  %v195_v61 = vld [vmem:[#allocation13 + $0x8] sm:$0xff] }
  0xb3   :  { %v5063_v5 = vsub.f32 %v5043_v59, %v5009_v27  ;;  %v448_v6 = vsub.f32 %v5041_v58, %v396_v30  ;;  %v5067_v7 = vsub.f32 %v5043_v59, %v397_v31  ;;  %v307_v9 = vsel %vm295_vm4, %v267_v43, %v303_v62  ;;  %v185_v31 = vld [vmem:[#allocation8 + $0x18] sm:$0xff]  ;;  %v190_v43 = vld [vmem:[#allocation10 + $0x10] sm:$0xff] }
  0xb4   :  { %v5070_v10 = vsub.f32 %v5041_v58, %v412_v2  ;;  %v5073_v8 = vsub.f32 %v5043_v59, %v413_v3  ;;  %v308_v11 = vsel %vm296_vm5, %v268_v54, %v304_v1  ;;  %v468_v14 = vsub.f32 %v5055_v0, %v440_v63  ;;  %v200_v1 = vld [vmem:[#allocation14] sm:$0xff] }
  0xb5   :  { %v456_v12 = vsub.f32 %v440_v63, %v448_v6  ;;  %v457_v13 = vsub.f32 %v441_v4, %v5067_v7  ;;  %v469_v19 = vsub.f32 %v5063_v5, %v441_v4  ;;  %v452_v25 = vsub.f32 %v448_v6, %v5055_v0 }
  0xb6   :  { %vm432_vm6 = vcmp.eq.f32.partialorder %v5070_v10, 0.0  ;;  %vm433_vm7 = vcmp.eq.f32.partialorder %v5073_v8, 0.0  ;;  %v460_v15 = vmul.f32 2.0, %v5070_v10  ;;  %v461_v16 = vmul.f32 2.0, %v5073_v8 }
  0xb7   :  { %v436_v17 = vsel %vm432_vm6, 1.0, %v5070_v10  ;;  %v437_v18 = vsel %vm433_vm7, 1.0, %v5073_v8  ;;  %v472_v20 = vmul.f32 4.0, %v5070_v10  ;;  %v473_v30 = vmul.f32 4.0, %v5073_v8 }
  0xb8   :  { %v464_v29 = vadd.f32 %v460_v15, %v456_v12  ;;  %vm480_vm8 = vcmp.eq.f32.partialorder %v5041_v58, %v5001_v22  ;;  %v4550_v34 = vpop.eup %4549  ;;  %v465_v35 = vadd.f32 %v461_v16, %v457_v13  ;;  %vm484_vm9 = vcmp.eq.f32.partialorder %v5041_v58, %v5007_v26 }
  0xb9   :  { %v476_v37 = vadd.f32 %v472_v20, %v468_v14  ;;  %4553 = vrcp.f32 %v436_v17  ;;  %v4552_v39 = vpop.eup %4551  ;;  %v312_v40 = vmul.f32 %v4550_v34, %v307_v9  ;;  %v477_v41 = vadd.f32 %v473_v30, %v469_v19 }
  0xba   :  { %4555 = vrcp.f32 %v437_v18  ;;  %v5091_v44 = vmul.f32 0.003921569, %v183_v21  ;;  %v314_v45 = vmul.f32 %v4552_v39, %v308_v11  ;;  %vm485_vm10 = vcmp.eq.f32.partialorder %v5043_v59, %v5009_v27 }
  0xbb   :  { %v5095_v46 = vmul.f32 0.003921569, %v188_v33  ;;  %v5097_v47 = vmul.f32 0.003921569, %v185_v31  ;;  %v320_v48 = vmul.f32 0.16666667, %v312_v40  ;;  %v453_v49 = vsub.f32 %v5067_v7, %v5063_v5 }
  0xbc   :  { %vm481_vm11 = vcmp.eq.f32.partialorder %v5043_v59, %v5003_v23  ;;  %v5103_v50 = vmul.f32 0.003921569, %v189_v38  ;;  %v321_v51 = vmul.f32 0.16666667, %v314_v45  ;;  %v488_v52 = vsel %vm484_vm9, %v464_v29, %v476_v37 }
  0xbd   :  { %v213_v53 = vmul.f32 0.003921569, %v187_v42  ;;  %v214_v27 = vmul.f32 0.003921569, %v190_v43  ;;  %v324_v54 = vand.u32 2147483647, %v320_v48  ;;  %v489_v55 = vsel %vm485_vm10, %v465_v35, %v477_v41 }
  0xbe   :  { %v217_v56 = vmax.f32 %v5091_v44, %v5097_v47  ;;  %v218_v57 = vmax.f32 %v5095_v46, %v5103_v50  ;;  %v334_v60 = vand.u32 2147483647, %v321_v51  ;;  %v225_v62 = vmin.f32 %v5091_v44, %v5097_v47 }
  0xbf   :  { %v226_v63 = vmin.f32 %v5095_v46, %v5103_v50  ;;  %v327_v26 = vfloor.f32 %v324_v54  ;;  %v492_v0 = vsel %vm480_vm8, %v452_v25, %v488_v52  ;;  %v493_v5 = vsel %vm481_vm11, %v453_v49, %v489_v55 }
  0xc0   :  { %v5119_v2 = vmax.f32 %v217_v56, %v213_v53  ;;  %v5121_v3 = vmax.f32 %v218_v57, %v214_v27  ;;  %v337_v4 = vfloor.f32 %v334_v60  ;;  %v229_v6 = vmin.f32 %v225_v62, %v213_v53 }
  0xc1   :  { %v230_v7 = vmin.f32 %v226_v63, %v214_v27  ;;  %v328_v9 = vsub.f32 %v324_v54, %v327_v26  ;;  %v332_v11 = vand.u32 2147483648, %v320_v48  ;;  %v342_v12 = vand.u32 2147483648, %v321_v51 }
  0xc2   :  { %v5126_v13 = vmul.f32 0.003921569, %v195_v61  ;;  %v338_v22 = vsub.f32 %v334_v60, %v337_v4  ;;  %v5129_v15 = vsub.f32 %v5119_v2, %v229_v6  ;;  %v5134_v17 = vmul.f32 0.003921569, %v200_v1 }
  0xc3   :  { %v4554_v14 = vpop.eup %4553  ;;  %v5132_v16 = vsub.f32 %v5121_v3, %v230_v7  ;;  %vm329_vm12 = vcmp.eq.f32.partialorder %v328_v9, 1.0  ;;  %v5138_v19 = vsub.f32 %v5119_v2, %v5091_v44  ;;  %v5142_v20 = vsub.f32 %v5121_v3, %v5095_v46 }
  0xc4   :  { %v4556_v18 = vpop.eup %4555  ;;  %v497_v23 = vmul.f32 %v4554_v14, %v492_v0  ;;  %v330_v21 = vsel %vm329_vm12, 0.0, %v328_v9  ;;  %vm339_vm13 = vcmp.eq.f32.partialorder %v338_v22, 1.0  ;;  %vm249_vm14 = vcmp.eq.f32.partialorder %v5129_v15, 0.0 }
  0xc5   :  { %v499_v25 = vmul.f32 %v4556_v18, %v493_v5  ;;  %v331_v29 = vand.u32 2147483647, %v330_v21  ;;  %v340_v30 = vsel %vm339_vm13, 0.0, %v338_v22  ;;  %vm250_vm15 = vcmp.eq.f32.partialorder %v5132_v16, 0.0 }
  0xc6   :  { %v504_v31 = vmul.f32 0.16666667, %v497_v23  ;;  %v341_v33 = vand.u32 2147483647, %v340_v30  ;;  %v5148_v35 = vsub.f32 %v5119_v2, %v5097_v47  ;;  %v5152_v37 = vsub.f32 %v5121_v3, %v5103_v50  ;;  %v197_v23 = vld [vmem:[#allocation13 + $0x18] sm:$0xff] }
  0xc7   :  { %v505_v34 = vmul.f32 0.16666667, %v499_v25  ;;  %v333_v38 = vor.u32 %v332_v11, %v331_v29  ;;  %v5155_v40 = vsub.f32 %v5119_v2, %v213_v53  ;;  %v5158_v41 = vsub.f32 %v5121_v3, %v214_v27 }
  0xc8   :  { %v508_v39 = vand.u32 2147483647, %v504_v31  ;;  %v343_v42 = vor.u32 %v342_v12, %v341_v33  ;;  %v253_v45 = vsel %vm249_vm14, 1.0, %v5129_v15  ;;  %v254_v48 = vsel %vm250_vm15, 1.0, %v5132_v16 }
  0xc9   :  { %v518_v43 = vand.u32 2147483647, %v505_v34  ;;  %vm364_vm0 = vcmp.ne.f32.partialorder %v333_v38, 0.0  ;;  %vm368_vm1 = vcmp.lt.f32.partialorder %v333_v38, 0.0  ;;  %v376_v49 = vadd.f32 1.0, %v333_v38 }
  0xca   :  { %v511_v51 = vfloor.f32 %v508_v39  ;;  %vm365_vm2 = vcmp.ne.f32.partialorder %v343_v42, 0.0  ;;  %vm369_vm3 = vcmp.lt.f32.partialorder %v343_v42, 0.0  ;;  %vm5162_vm4 = vmand %vm368_vm1, %vm364_vm0  ;;  %v377_v53 = vadd.f32 1.0, %v343_v42 }
  0xcb   :  { %v521_v54 = vfloor.f32 %v518_v43  ;;  %vm5166_vm5 = vmand %vm369_vm3, %vm365_vm2  ;;  %v516_v56 = vand.u32 2147483648, %v504_v31  ;;  %v526_v57 = vand.u32 2147483648, %v505_v34  ;;  %v269_v60 = vsub.f32 %v5155_v40, %v5148_v35 }
  0xcc   :  { %v512_v55 = vsub.f32 %v508_v39, %v511_v51  ;;  %v380_v61 = vsel %vm5162_vm4, %v376_v49, %v333_v38  ;;  %v273_v63 = vsub.f32 %v5138_v19, %v5155_v40  ;;  %v274_v26 = vsub.f32 %v5142_v20, %v5158_v41  ;;  %v201_v38 = vld [vmem:[#allocation14 + $0x8] sm:$0xff] }
  0xcd   :  { %v522_v62 = vsub.f32 %v518_v43, %v521_v54  ;;  %v381_v0 = vsel %vm5166_vm5, %v377_v53, %v343_v42  ;;  %v277_v1 = vmul.f32 2.0, %v5129_v15  ;;  %v278_v4 = vmul.f32 2.0, %v5132_v16  ;;  %v202_v43 = vld [vmem:[#allocation14 + $0x10] sm:$0xff] }
  0xce   :  { %vm513_vm6 = vcmp.eq.f32.partialorder %v512_v55, 1.0  ;;  %vm604_vm7 = vcmask 261120   ;;  %v270_v6 = vsub.f32 %v5158_v41, %v5152_v37  ;;  %v285_v7 = vsub.f32 %v5148_v35, %v5138_v19 }
  0xcf   :  { %v514_v5 = vsel %vm513_vm6, 0.0, %v512_v55  ;;  %vm523_vm8 = vcmp.eq.f32.partialorder %v522_v62, 1.0  ;;  %v384_v9 = vmul.f32 6.2831855, %v380_v61  ;;  %v289_v14 = vmul.f32 4.0, %v5129_v15 }
  0xd0   :  { %v515_v11 = vand.u32 2147483647, %v514_v5  ;;  %v524_v12 = vsel %vm523_vm8, 0.0, %v522_v62  ;;  %v385_v22 = vmul.f32 6.2831855, %v381_v0  ;;  %v286_v21 = vsub.f32 %v5152_v37, %v5142_v20  ;;  %v199_v37 = vld [vmem:[#allocation13 + $0x28] sm:$0xff] }
  0xd1   :  { %v525_v18 = vand.u32 2147483647, %v524_v12  ;;  %v290_v25 = vmul.f32 4.0, %v5132_v16  ;;  %v281_v30 = vadd.f32 %v277_v1, %v273_v63  ;;  %v282_v31 = vadd.f32 %v278_v4, %v274_v26 }
  0xd2   :  { %v517_v29 = vor.u32 %v516_v56, %v515_v11  ;;  %vm297_vm9 = vcmp.eq.f32.partialorder %v5119_v2, %v5091_v44  ;;  %v293_v33 = vadd.f32 %v289_v14, %v285_v7  ;;  %vm301_vm10 = vcmp.eq.f32.partialorder %v5119_v2, %v5097_v47 }
  0xd3   :  { %v527_v19 = vor.u32 %v526_v57, %v525_v18  ;;  %4557 = vrcp.f32 %v253_v45  ;;  %v5194_v39 = vmul.f32 0.003921569, %v197_v23  ;;  %v294_v41 = vadd.f32 %v290_v25, %v286_v21  ;;  %v600_v45 = vld [vmem:[#allocation2] sm:$0xff] }
  0xd4   :  { %vm548_vm11 = vcmp.ne.f32.partialorder %v517_v29, 0.0  ;;  %vm552_vm12 = vcmp.lt.f32.partialorder %v517_v29, 0.0  ;;  %v560_v34 = vadd.f32 1.0, %v517_v29  ;;  %vm298_vm1 = vcmp.eq.f32.partialorder %v5121_v3, %v5095_v46 }
  0xd5   :  { %vm549_vm13 = vcmp.ne.f32.partialorder %v527_v19, 0.0  ;;  %vm553_vm14 = vcmp.lt.f32.partialorder %v527_v19, 0.0  ;;  %vm556_vm15 = vmand %vm552_vm12, %vm548_vm11  ;;  %v561_v20 = vadd.f32 1.0, %v527_v19  ;;  %vm302_vm2 = vcmp.eq.f32.partialorder %v5121_v3, %v5103_v50 }
  0xd6   :  { %vm557_vm0 = vmand %vm553_vm14, %vm549_vm13  ;;  %v564_v42 = vsel %vm556_vm15, %v560_v34, %v517_v29  ;;  %4559 = vrcp.f32 %v254_v48  ;;  %v305_v52 = vsel %vm301_vm10, %v281_v30, %v293_v33  ;;  %v5203_v53 = vmul.f32 0.003921569, %v201_v38 }
  0xd7   :  { %v565_v49 = vsel %vm557_vm0, %v561_v20, %v527_v19  ;;  %v568_v51 = vmul.f32 6.2831855, %v564_v42  ;;  %v398_v27 = vmul.f32 0.003921569, %v199_v37  ;;  %v402_v55 = vmax.f32 %v5126_v13, %v5194_v39 }
  0xd8   :  { %v569_v54 = vmul.f32 6.2831855, %v565_v49  ;;  %v410_v56 = vmin.f32 %v5126_v13, %v5194_v39  ;;  %v306_v50 = vsel %vm302_vm2, %v282_v31, %v294_v41  ;;  %v399_v48 = vmul.f32 0.003921569, %v202_v43 }
  0xd9   :  { %v572_v57 = vsub.f32 %v384_v9, %v568_v51  ;;  %v5210_v61 = vsel %vm604_vm7, %v600_v45, 0  ;;  %v403_v47 = vmax.f32 %v5134_v17, %v5203_v53  ;;  %v411_v63 = vmin.f32 %v5134_v17, %v5203_v53 }
  0xda   :  { %v573_v62 = vsub.f32 %v385_v22, %v569_v54  ;;  %v5217_v26 = vand.u32 4294901760, %v5210_v61  ;;  %v309_v1 = vsel %vm297_vm9, %v269_v60, %v305_v52  ;;  %v5225_v5 = vmax.f32 %v402_v55, %v398_v27 }
  0xdb   :  { %v576_v0 = vand.u32 2147483647, %v572_v57  ;;  %v414_v7 = vmin.f32 %v410_v56, %v398_v27  ;;  %v310_v12 = vsel %vm298_vm1, %v270_v6, %v306_v50  ;;  %v5231_v18 = vmax.f32 %v403_v47, %v399_v48 }
  0xdc   :  { %v577_v4 = vand.u32 2147483647, %v573_v62  ;;  %3956 = vmatprep.mubr.f32.mxu0 %v5217_v26  ;;  %v415_v35 = vmin.f32 %v411_v63, %v399_v48  ;;  %v442_v33 = vsub.f32 %v5225_v5, %v5126_v13  ;;  %v450_v34 = vsub.f32 %v5225_v5, %v398_v27 }
  0xdd   :  { %v4558_v9 = vpop.eup %4557  ;;  %v580_v11 = vmul.f32 0.15915456, %v576_v0  ;;  %v5236_v21 = vsub.f32 %v5225_v5, %v414_v7  ;;  %v446_v37 = vsub.f32 %v5225_v5, %v5194_v39  ;;  %v443_v43 = vsub.f32 %v5231_v18, %v5134_v17 }
  0xde   :  { %v581_v14 = vmul.f32 0.15915456, %v577_v4  ;;  %v316_v22 = vmul.f32 %v4558_v9, %v309_v1  ;;  %v5245_v6 = vsub.f32 %v5231_v18, %v415_v35  ;;  %v451_v45 = vsub.f32 %v5231_v18, %v399_v48 }
  0xdf   :  { %v612_v40 = vand.u32 4294901760, %v580_v11  ;;  %vm434_vm3 = vcmp.eq.f32.partialorder %v5236_v21, 0.0  ;;  %v447_v51 = vsub.f32 %v5231_v18, %v5203_v53  ;;  %v458_v27 = vsub.f32 %v442_v33, %v450_v34 }
  0xe0   :  { %v4560_v44 = vpop.eup %4559  ;;  %v615_v60 = vand.u32 4294901760, %v581_v14  ;;  %v5233_v23 = vmul.f32 0.16666667, %v316_v22  ;;  %vm435_vm4 = vcmp.eq.f32.partialorder %v5245_v6, 0.0  ;;  %v438_v54 = vsel %vm434_vm3, 1.0, %v5236_v21 }
  0xe1   :  { %v5238_v25 = vsub.f32 %v580_v11, %v612_v40  ;;  %v318_v29 = vmul.f32 %v4560_v44, %v310_v12  ;;  %v462_v55 = vmul.f32 2.0, %v5236_v21  ;;  %v470_v50 = vsub.f32 %v446_v37, %v442_v33 }
  0xe2   :  { %v5240_v30 = vpack.c.bf16 %v615_v60, %v612_v40  ;;  %v5242_v46 = vsub.f32 %v581_v14, %v615_v60  ;;  %v344_v20 = vand.u32 2147483647, %v5233_v23  ;;  %v474_v48 = vmul.f32 4.0, %v5236_v21 }
  0xe3   :  { %v703_v31 = vand.u32 4294901760, %v5238_v25  ;;  %v5248_v19 = vmul.f32 0.16666667, %v318_v29  ;;  %v439_v47 = vsel %vm435_vm4, 1.0, %v5245_v6  ;;  %v459_v63 = vsub.f32 %v443_v43, %v451_v45 }
  0xe4   :  { %v710_v38 = vand.u32 4294901760, %v5242_v46  ;;  %4262 = vmatprep.subr.bf16.mxu1 %v5240_v30  ;;  %v347_v57 = vfloor.f32 %v344_v20  ;;  %v463_v1 = vmul.f32 2.0, %v5245_v6  ;;  %v471_v4 = vsub.f32 %v447_v51, %v443_v43 }
  0xe5   :  { %v704_v41 = vsub.f32 %v5238_v25, %v703_v31  ;;  %v354_v42 = vand.u32 2147483647, %v5248_v19  ;;  %4264 = vmatpush3.bf16.msra.mxu1 %v5240_v30  ;;  %v475_v7 = vmul.f32 4.0, %v5245_v6  ;;  %4561 = vrcp.f32 %v438_v54 }
  0xe6   :  { %v711_v49 = vsub.f32 %v5242_v46, %v710_v38  ;;  %v348_v9 = vsub.f32 %v344_v20, %v347_v57  ;;  %v466_v11 = vadd.f32 %v462_v55, %v458_v27  ;;  %v478_v12 = vadd.f32 %v474_v48, %v470_v50 }
  0xe7   :  { %v705_v52 = vand.u32 4294901760, %v704_v41  ;;  %v357_v62 = vfloor.f32 %v354_v42  ;;  %vm486_vm5 = vcmp.eq.f32.partialorder %v5225_v5, %v5194_v39  ;;  %4563 = vrcp.f32 %v439_v47 }
  0xe8   :  { %v712_v56 = vand.u32 4294901760, %v711_v49  ;;  %v467_v22 = vadd.f32 %v463_v1, %v459_v63  ;;  %v479_v35 = vadd.f32 %v475_v7, %v471_v4  ;;  %v5279_v40 = vsub.f32 %v5210_v61, %v5217_v26 }
  0xe9   :  { %v358_v14 = vsub.f32 %v354_v42, %v357_v62  ;;  %v454_v44 = vsub.f32 %v450_v34, %v446_v37  ;;  %vm487_vm6 = vcmp.eq.f32.partialorder %v5231_v18, %v5203_v53  ;;  %v5283_v60 = vpack.c.bf16 %v710_v38, %v703_v31 }
  0xea   :  { %v4269_v0 = vpack.c.bf16 %v712_v56, %v705_v52  ;;  %vm349_vm8 = vcmp.eq.f32.partialorder %v348_v9, 1.0  ;;  %vm482_vm9 = vcmp.eq.f32.partialorder %v5225_v5, %v5126_v13  ;;  %v490_v29 = vsel %vm486_vm5, %v466_v11, %v478_v12 }
  0xeb   :  { %v5288_v39 = vand.u32 4294901760, %v5279_v40  ;;  %vm359_vm10 = vcmp.eq.f32.partialorder %v358_v14, 1.0  ;;  %v455_v33 = vsub.f32 %v451_v45, %v447_v51  ;;  %vm483_vm11 = vcmp.eq.f32.partialorder %v5231_v18, %v5134_v17 }
  0xec   :  { %4270 = vmatprep.subr.bf16.mxu0 %v4269_v0  ;;  %v491_v61 = vsel %vm487_vm6, %v467_v22, %v479_v35  ;;  %v350_v53 = vsel %vm349_vm8, 0.0, %v348_v9  ;;  %v494_v31 = vsel %vm482_vm9, %v454_v44, %v490_v29  ;;  %v360_v38 = vsel %vm359_vm10, 0.0, %v358_v14 }
  0xed   :  { %4272 = vmatpush3.bf16.msra.mxu0 %v4269_v0  ;;  %v683_v34 = vsub.f32 %v5279_v40, %v5288_v39  ;;  %v495_v13 = vsel %vm483_vm11, %v455_v33, %v491_v61  ;;  %v351_v41 = vand.u32 2147483647, %v350_v53  ;;  %v352_v42 = vand.u32 2147483648, %v5233_v23  ;;  %v601_v61 = vld [vmem:[#allocation2 + $0x8] sm:$0xff] }
  0xee   :  { %v361_v49 = vand.u32 2147483647, %v360_v38  ;;  %v362_v17 = vand.u32 2147483648, %v5248_v19 }
  0xef   :  { %v5294_v20 = vand.u32 4294901760, %v683_v34  ;;  %v4562_v37 = vpop.eup %4561  ;;  %v353_v54 = vor.u32 %v352_v42, %v351_v41 }
  0xf0   :  { %v501_v43 = vmul.f32 %v4562_v37, %v494_v31  ;;  %v363_v56 = vor.u32 %v362_v17, %v361_v49 }
  0xf1   :  { %3945 = vmatprep.mubr.f32.mxu1 %v5294_v20  ;;  %v4564_v45 = vpop.eup %4563  ;;  %vm366_vm12 = vcmp.ne.f32.partialorder %v353_v54, 0.0  ;;  %vm370_vm13 = vcmp.lt.f32.partialorder %v353_v54, 0.0  ;;  %v378_v23 = vadd.f32 1.0, %v353_v54 }
  0xf2   :  { %v503_v51 = vmul.f32 %v4564_v45, %v495_v13  ;;  %v506_v52 = vmul.f32 0.16666667, %v501_v43  ;;  %vm367_vm14 = vcmp.ne.f32.partialorder %v363_v56, 0.0  ;;  %vm371_vm15 = vcmp.lt.f32.partialorder %v363_v56, 0.0  ;;  %vm5299_vm1 = vmand %vm370_vm13, %vm366_vm12 }
  0xf3   :  { %v379_v0 = vadd.f32 1.0, %v363_v56  ;;  %vm5303_vm2 = vmand %vm371_vm15, %vm367_vm14  ;;  %v382_v12 = vsel %vm5299_vm1, %v378_v23, %v353_v54  ;;  %v609_v13 = vsel %vm604_vm7, %v601_v61, 0  ;;  %vm1139_vm7 = vcmask 130048  }
  0xf4   :  { %v507_v27 = vmul.f32 0.16666667, %v503_v51  ;;  %v528_v55 = vand.u32 2147483647, %v506_v52  ;;  %v536_v47 = vand.u32 2147483648, %v506_v52  ;;  %v5312_v49 = vand.u32 4294901760, %v609_v13 }
  0xf5   :  { %v383_v35 = vsel %vm5303_vm2, %v379_v0, %v363_v56  ;;  %v386_v33 = vmul.f32 6.2831855, %v382_v12  ;;  %v603_v12 = vld [vmem:[#allocation5 + $0x8] sm:$0xff] }
  0xf6   :  { %v531_v57 = vfloor.f32 %v528_v55  ;;  %v538_v50 = vand.u32 2147483647, %v507_v27  ;;  %v546_v9 = vand.u32 2147483648, %v507_v27  ;;  %v387_v31 = vmul.f32 6.2831855, %v383_v35 }
  0xf7   :  { %v5315_v52 = vsub.f32 %v609_v13, %v5312_v49 }
  0xf8   :  { %v532_v48 = vsub.f32 %v528_v55, %v531_v57  ;;  %v541_v62 = vfloor.f32 %v538_v50 }
  0xf9   :  { %v5318_v55 = vand.u32 4294901760, %v5315_v52 }
  0xfa   :  { %vm533_vm0 = vcmp.eq.f32.partialorder %v532_v48, 1.0  ;;  %v542_v63 = vsub.f32 %v538_v50, %v541_v62 }
  0xfb   :  { %v534_v1 = vsel %vm533_vm0, 0.0, %v532_v48  ;;  %v693_v50 = vsub.f32 %v5315_v52, %v5318_v55 }
  0xfc   :  { %v535_v7 = vand.u32 2147483647, %v534_v1  ;;  %vm543_vm3 = vcmp.eq.f32.partialorder %v542_v63, 1.0 }
  0xfd   :  { %v544_v11 = vsel %vm543_vm3, 0.0, %v542_v63  ;;  %v5322_v19 = vand.u32 4294901760, %v693_v50 }
  0xfe   :  { %v537_v14 = vor.u32 %v536_v47, %v535_v7  ;;  %v545_v22 = vand.u32 2147483647, %v544_v11 }
 0x100   :  { %v547_v44 = vor.u32 %v546_v9, %v545_v22  ;;  %vm550_vm4 = vcmp.ne.f32.partialorder %v537_v14, 0.0  ;;  %vm554_vm5 = vcmp.lt.f32.partialorder %v537_v14, 0.0  ;;  %v562_v29 = vadd.f32 1.0, %v537_v14 }
 0x101   :  { %vm558_vm6 = vmand %vm554_vm5, %vm550_vm4  ;;  %v4277_v9 = vpack.c.bf16 %v5242_v46, %v5238_v25  ;;  %v602_v46 = vld [vmem:[#allocation5] sm:$0xff] }
 0x102   :  { %vm551_vm8 = vcmp.ne.f32.partialorder %v547_v44, 0.0  ;;  %vm555_vm9 = vcmp.lt.f32.partialorder %v547_v44, 0.0  ;;  %v563_v34 = vadd.f32 1.0, %v547_v44  ;;  %v566_v53 = vsel %vm558_vm6, %v562_v29, %v537_v14 }
 0x103   :  { %vm559_vm10 = vmand %vm555_vm9, %vm551_vm8  ;;  %v570_v38 = vmul.f32 6.2831855, %v566_v53  ;;  %v1147_v14 = vand.u32 4294901760, %v602_v46 }
 0x104   :  { %v567_v37 = vsel %vm559_vm10, %v563_v34, %v547_v44 }
 0x105   :  { %v571_v41 = vmul.f32 6.2831855, %v567_v37  ;;  %v574_v42 = vsub.f32 %v386_v33, %v570_v38  ;;  %v1235_v35 = vsub.f32 %v602_v46, %v1147_v14  ;;  %v423_v46 = vadd.f32 1e-08, %v5231_v18 }
 0x107   :  { %v575_v43 = vsub.f32 %v387_v31, %v571_v41  ;;  %v578_v45 = vand.u32 2147483647, %v574_v42  ;;  %v1236_v29 = vand.u32 4294901760, %v1235_v35 }
 0x109   :  { %v579_v17 = vand.u32 2147483647, %v575_v43  ;;  %v582_v51 = vmul.f32 0.15915456, %v578_v45 }
 0x10b   :  { %v583_v54 = vmul.f32 0.15915456, %v579_v17  ;;  %v618_v27 = vand.u32 4294901760, %v582_v51 }
 0x10d   :  { %v621_v56 = vand.u32 4294901760, %v583_v54  ;;  %v716_v57 = vsub.f32 %v582_v51, %v618_v27 }
 0x10f   :  { %v4265_v48 = vpack.c.bf16 %v621_v56, %v618_v27  ;;  %v717_v62 = vand.u32 4294901760, %v716_v57  ;;  %v723_v23 = vsub.f32 %v583_v54, %v621_v56 }
 0x111   :  { %v718_v47 = vsub.f32 %v716_v57, %v717_v62  ;;  %v724_v63 = vand.u32 4294901760, %v723_v23  ;;  %4266 = vmatprep.subr.bf16.mxu1 %v4265_v48  ;;  %v4281_v11 = vpack.c.bf16 %v723_v23, %v716_v57  ;;  %v235_v57 = vadd.f32 1e-08, %v5005_v24 }
 0x112   :  { %4268 = vmatpush3.bf16.msra.mxu1 %v4265_v48 }
 0x113   :  { %v719_v0 = vand.u32 4294901760, %v718_v47  ;;  %v725_v1 = vsub.f32 %v723_v23, %v724_v63  ;;  %v4297_v25 = vpack.c.bf16 %v724_v63, %v717_v62  ;;  %v420_v23 = vadd.f32 1e-08, %v5041_v58 }
 0x114   :  { %v421_v63 = vadd.f32 1e-08, %v5043_v59  ;;  %4565 = vrcp.f32 %v235_v57 }
 0x115   :  { %v726_v4 = vand.u32 4294901760, %v725_v1  ;;  %3946 = vmatmul.mubr.f32.vlgmr.msra.gmra.mrb[0].mxu1 %v5322_v19 }
 0x117   :  { %v4273_v7 = vpack.c.bf16 %v726_v4, %v719_v0  ;;  %v237_v4 = vadd.f32 1e-08, %v5119_v2 }
 0x119   :  { %4274 = vmatprep.subr.bf16.mxu0 %v4273_v7 }
 0x11a   :  { %4276 = vmatpush3.bf16.msra.mxu0 %v4273_v7 }
 0x11b   :  { %4278 = vmatprep.subr.bf16.mxu0 %v4277_v9 }
 0x11d   :  { %3957 = vmatmul.mubr.f32.vlgmr.msra.gmra.mrb[0].mxu0 %v5312_v49 }
 0x11e   :  { %4280 = vmatpush3.bf16.msra.mxu0 %v4277_v9  ;;  %3967 = vmatprep.mubr.f32.mxu0 %v5279_v40  ;;  %v238_v9 = vadd.f32 1e-08, %v5121_v3 }
 0x11f   :  { %4282 = vmatprep.subr.bf16.mxu0 %v4281_v11 }
 0x122   :  { %4284 = vmatpush3.bf16.msra.mxu0 %v4281_v11  ;;  %v422_v11 = vadd.f32 1e-08, %v5225_v5 }
 0x123   :  { %4286 = vmatprep.subr.bf16.mxu0 %v5240_v30 }
 0x125   :  { %3968 = vmatmul.mubr.f32.vlgmr.msra.gmra.mrb[0].mxu0 %v5315_v52 }
 0x126   :  { %4288 = vmatpush3.bf16.msra.mxu0 %v5240_v30  ;;  %3978 = vmatprep.mubr.f32.mxu0 %v5288_v39 }
 0x127   :  { %4290 = vmatprep.subr.bf16.mxu0 %v4265_v48 }
 0x12a   :  { %4292 = vmatpush3.bf16.msra.mxu0 %v4265_v48 }
 0x12b   :  { %4294 = vmatprep.subr.bf16.mxu0 %v5283_v60 }
 0x12d   :  { %3979 = vmatmul.mubr.f32.vlgmr.msra.gmra.mrb[0].mxu0 %v5318_v55 }
 0x12e   :  { %4296 = vmatpush3.bf16.msra.mxu0 %v5283_v60  ;;  %3989 = vmatprep.mubr.f32.mxu0 %v5217_v26  ;;  %v1150_v60 = vand.u32 4294901760, %v603_v12 }
 0x12f   :  { %4298 = vmatprep.subr.bf16.mxu0 %v4297_v25 }
 0x130   :  { %v5342_v22 = vpack.c.bf16 %v1150_v60, %v1147_v14  ;;  %v1242_v44 = vsub.f32 %v603_v12, %v1150_v60  ;;  %v4566_v14 = vpop.eup %4565 }
 0x132   :  { %4300 = vmatpush3.bf16.msra.mxu0 %v4297_v25  ;;  %4310 = vmatprep.subr.bf16.mxu1 %v5342_v22  ;;  %v1243_v33 = vand.u32 4294901760, %v1242_v44  ;;  %v5351_v38 = vpack.c.bf16 %v1242_v44, %v1235_v35 }
 0x133   :  { %4302 = vmatprep.subr.bf16.mxu0 %v5240_v30  ;;  %4312 = vmatpush3.bf16.msra.mxu1 %v5342_v22 }
 0x134   :  { %v1244_v61 = vsub.f32 %v1242_v44, %v1243_v33  ;;  %v5354_v37 = vpack.c.bf16 %v1243_v33, %v1236_v29  ;;  %v240_v33 = vmul.f32 %v4566_v14, %v5014_v32 }
 0x135   :  { %3990 = vmatmul.mubr.f32.vlgmr.msra.gmra.mrb[0].mxu0 %v5312_v49 }
 0x136   :  { %4304 = vmatpush3.bf16.msra.mxu0 %v5240_v30  ;;  %4000 = vmatprep.mubr.f32.mxu0 %v5217_v26  ;;  %v1237_v30 = vsub.f32 %v1235_v35, %v1236_v29  ;;  %v1245_v53 = vand.u32 4294901760, %v1244_v61 }
 0x137   :  { %4306 = vmatprep.subr.bf16.mxu0 %v4265_v48 }
 0x138   :  { %v1238_v34 = vand.u32 4294901760, %v1237_v30 }
 0x13a   :  { %4308 = vmatpush3.bf16.msra.mxu0 %v4265_v48  ;;  %v5346_v31 = vpack.c.bf16 %v1245_v53, %v1238_v34  ;;  %v236_v48 = vadd.f32 1e-08, %v5011_v28 }
 0x13c   :  { %4314 = vmatprep.subr.bf16.mxu1 %v5346_v31  ;;  %4386 = vmatprep.subr.bf16.mxu0 %v5346_v31  ;;  %4567 = vrcp.f32 %v236_v48 }
 0x13d   :  { %4001 = vmatmul.mubr.f32.vlgmr.msra.gmra.mrb[0].mxu0 %v5312_v49  ;;  %4569 = vrcp.f32 %v420_v23 }
 0x13e   :  { %4388 = vmatpush3.bf16.msra.mxu0 %v5346_v31  ;;  %4571 = vrcp.f32 %v421_v63 }
 0x13f   :  { %4390 = vmatprep.subr.bf16.mxu0 %v5351_v38  ;;  %4573 = vrcp.f32 %v237_v4 }
 0x140   :  { %4575 = vrcp.f32 %v238_v9 }
 0x141   :  { %4577 = vrcp.f32 %v422_v11 }
 0x142   :  { %4579 = vrcp.f32 %v423_v46 }
 0x146   :  { %v4568_v60 = vpop.eup %4567 }
 0x147   :  { %v4570_v35 = vpop.eup %4569  ;;  %v242_v61 = vmul.f32 %v4568_v60, %v5021_v36 }
 0x148   :  { %v4572_v44 = vpop.eup %4571  ;;  %v425_v34 = vmul.f32 %v4570_v35, %v5070_v10 }
 0x149   :  { %v4574_v29 = vpop.eup %4573  ;;  %v427_v53 = vmul.f32 %v4572_v44, %v5073_v8 }
 0x14a   :  { %v4576_v30 = vpop.eup %4575 }
 0x14b   :  { %v246_v32 = vmul.f32 %v4576_v30, %v5132_v16 }
 0x1e8   :  { %v3947_v13 = vpop.f32.mrb[0].mxu1 }
 0x1e9   :  { %v686_v41 = vpop.f32.mrb[1].mxu1 }
 0x210   :  { %v4002_v42 = vpop.f32.mrb[0].mxu0 }
 0x211   :  { %v4477_v43 = vadd.f32 %v4002_v42, %v3947_v13  ;;  %v1129_v45 = vpop.f32.mrb[1].mxu0  ;;  %v4578_v13 = vpop.eup %4577  ;;  %v584_v42 = vsub.f32 %v240_v33, %v425_v34 }
 0x212   :  { %v4478_v17 = vadd.f32 %v1129_v45, %v686_v41  ;;  %v4580_v41 = vpop.eup %4579  ;;  %v244_v45 = vmul.f32 %v4574_v29, %v5129_v15 }
 0x213   :  { %v1144_v51 = vsel %vm1139_vm7, %v4477_v43, 0  ;;  %v585_v43 = vsub.f32 %v242_v61, %v427_v53  ;;  %v588_v36 = vand.u32 2147483647, %v584_v42 }
 0x214   :  { %v5357_v54 = vand.u32 4294901760, %v1144_v51  ;;  %v1141_v27 = vsel %vm1139_vm7, %v4478_v17, 0  ;;  %v429_v17 = vmul.f32 %v4578_v13, %v5236_v21 }
 0x215   :  { %v5360_v56 = vand.u32 4294901760, %v1141_v27  ;;  %v589_v10 = vand.u32 2147483647, %v585_v43  ;;  %v1651_v57 = vand.u32 4294901760, %v588_v36 }
 0x216   :  { %v1224_v50 = vsub.f32 %v1144_v51, %v5357_v54  ;;  %v431_v51 = vmul.f32 %v4580_v41, %v5245_v6  ;;  %v586_v8 = vsub.f32 %v244_v45, %v429_v17 }
 0x217   :  { %v1214_v62 = vsub.f32 %v1141_v27, %v5360_v56  ;;  %v1654_v48 = vand.u32 4294901760, %v589_v10  ;;  %v1741_v6 = vsub.f32 %v588_v36, %v1651_v57 }
 0x218   :  { %v1225_v47 = vand.u32 4294901760, %v1224_v50  ;;  %v587_v27 = vsub.f32 %v246_v32, %v431_v51 }
 0x219   :  { %v1215_v0 = vand.u32 4294901760, %v1214_v62  ;;  %v4333_v23 = vpack.c.bf16 %v1654_v48, %v1651_v57  ;;  %v1742_v63 = vand.u32 4294901760, %v1741_v6 }
 0x21a   :  { %v1226_v1 = vsub.f32 %v1224_v50, %v1225_v47  ;;  %v591_v15 = vand.u32 2147483647, %v587_v27 }
 0x21b   :  { %v1216_v7 = vsub.f32 %v1214_v62, %v1215_v0 }
 0x21c   :  { %v1227_v12 = vand.u32 4294901760, %v1226_v1  ;;  %v1660_v21 = vand.u32 4294901760, %v591_v15 }
 0x21d   :  { %v1217_v25 = vand.u32 4294901760, %v1216_v7 }
 0x21e   :  { %v1762_v4 = vsub.f32 %v591_v15, %v1660_v21  ;;  %v593_v15 = vsub.f32 %v5011_v28, %v5043_v59 }
 0x21f   :  { %4007 = vmatprep.mubr.f32.mxu1 %v1217_v25 }
 0x220   :  { %4008 = vmatmul.mubr.f32.vlgmr.msra.gmra.mrb[2].mxu1 %v1227_v12  ;;  %v1763_v11 = vand.u32 4294901760, %v1762_v4 }
 0x221   :  { %4316 = vmatpush3.bf16.msra.mxu1 %v5346_v31  ;;  %4014 = vmatprep.mubr.f32.mxu1 %v5360_v56 }
 0x222   :  { %4318 = vmatprep.subr.bf16.mxu1 %v5351_v38  ;;  %v1764_v60 = vsub.f32 %v1762_v4, %v1763_v11 }
 0x224   :  { %v1765_v29 = vand.u32 4294901760, %v1764_v60 }
 0x228   :  { %4015 = vmatmul.mubr.f32.vlgmr.msra.gmra.mrb[2].mxu1 %v5357_v54 }
 0x229   :  { %4320 = vmatpush3.bf16.msra.mxu1 %v5351_v38  ;;  %4021 = vmatprep.mubr.f32.mxu1 %v1214_v62  ;;  %v590_v62 = vand.u32 2147483647, %v586_v8 }
 0x22a   :  { %4322 = vmatprep.subr.bf16.mxu1 %v5342_v22 }
 0x22b   :  { %v1657_v16 = vand.u32 4294901760, %v590_v62 }
 0x22d   :  { %v1755_v1 = vsub.f32 %v590_v62, %v1657_v16  ;;  %v4337_v25 = vpack.c.bf16 %v1660_v21, %v1657_v16  ;;  %v592_v62 = vsub.f32 %v5005_v24, %v5041_v58  ;;  %v597_v21 = vand.u32 2147483647, %v593_v15 }
 0x22f   :  { %v1756_v9 = vand.u32 4294901760, %v1755_v1  ;;  %v596_v16 = vand.u32 2147483647, %v592_v62  ;;  %v2693_v28 = vand.u32 4294901760, %v597_v21 }
 0x230   :  { %4022 = vmatmul.mubr.f32.vlgmr.msra.gmra.mrb[2].mxu1 %v1224_v50  ;;  %v1748_v50 = vsub.f32 %v589_v10, %v1654_v48 }
 0x231   :  { %4324 = vmatpush3.bf16.msra.mxu1 %v5342_v22  ;;  %4028 = vmatprep.mubr.f32.mxu1 %v1215_v0  ;;  %v1757_v14 = vsub.f32 %v1755_v1, %v1756_v9  ;;  %v4369_v61 = vpack.c.bf16 %v1763_v11, %v1756_v9  ;;  %v2690_v24 = vand.u32 4294901760, %v596_v16 }
 0x232   :  { %4326 = vmatprep.subr.bf16.mxu1 %v5354_v37  ;;  %v1749_v0 = vand.u32 4294901760, %v1748_v50  ;;  %v4349_v33 = vpack.c.bf16 %v1748_v50, %v1741_v6 }
 0x233   :  { %v1758_v44 = vand.u32 4294901760, %v1757_v14 }
 0x234   :  { %v1750_v7 = vsub.f32 %v1748_v50, %v1749_v0  ;;  %v4365_v30 = vpack.c.bf16 %v1749_v0, %v1742_v63  ;;  %v595_v50 = vsub.f32 %v5121_v3, %v5231_v18  ;;  %v4405_v0 = vpack.c.bf16 %v2693_v28, %v2690_v24 }
 0x236   :  { %v1751_v12 = vand.u32 4294901760, %v1750_v7  ;;  %v599_v59 = vand.u32 2147483647, %v595_v50 }
 0x238   :  { %4029 = vmatmul.mubr.f32.vlgmr.msra.gmra.mrb[2].mxu1 %v1225_v47  ;;  %v1743_v47 = vsub.f32 %v1741_v6, %v1742_v63  ;;  %v594_v6 = vsub.f32 %v5119_v2, %v5225_v5  ;;  %v2699_v63 = vand.u32 4294901760, %v599_v59  ;;  %v2780_v2 = vsub.f32 %v596_v16, %v2690_v24 }
 0x239   :  { %4328 = vmatpush3.bf16.msra.mxu1 %v5354_v37  ;;  %4035 = vmatprep.mubr.f32.mxu1 %v5360_v56  ;;  %v2787_v5 = vsub.f32 %v597_v21, %v2693_v28 }
 0x23a   :  { %4330 = vmatprep.subr.bf16.mxu1 %v5342_v22  ;;  %v1744_v46 = vand.u32 4294901760, %v1743_v47  ;;  %v598_v58 = vand.u32 2147483647, %v594_v6  ;;  %v2781_v3 = vand.u32 4294901760, %v2780_v2 }
 0x23b   :  { %v2788_v18 = vand.u32 4294901760, %v2787_v5 }
 0x23c   :  { %v4341_v35 = vpack.c.bf16 %v1751_v12, %v1744_v46  ;;  %v2782_v47 = vsub.f32 %v2780_v2, %v2781_v3 }
 0x23d   :  { %v2789_v7 = vsub.f32 %v2787_v5, %v2788_v18 }
 0x23e   :  { %v2783_v46 = vand.u32 4294901760, %v2782_v47 }
 0x23f   :  { %v2790_v12 = vand.u32 4294901760, %v2789_v7 }
 0x240   :  { %4036 = vmatmul.mubr.f32.vlgmr.msra.gmra.mrb[2].mxu1 %v5357_v54 }
 0x241   :  { %4332 = vmatpush3.bf16.msra.mxu1 %v5342_v22  ;;  %4042 = vmatprep.mubr.f32.mxu1 %v5360_v56  ;;  %v4345_v56 = vpack.c.bf16 %v1765_v29, %v1758_v44 }
 0x242   :  { %4334 = vmatprep.subr.bf16.mxu1 %v4333_v23 }
 0x248   :  { %4043 = vmatmul.mubr.f32.vlgmr.msra.gmra.mrb[2].mxu1 %v5357_v54  ;;  %v4353_v54 = vpack.c.bf16 %v1762_v4, %v1755_v1  ;;  %v2801_v4 = vsub.f32 %v599_v59, %v2699_v63 }
 0x249   :  { %4336 = vmatpush3.bf16.msra.mxu1 %v4333_v23  ;;  %4053 = vmatprep.mubr.f32.mxu1 %v5294_v20 }
 0x24a   :  { %4338 = vmatprep.subr.bf16.mxu1 %v4337_v25  ;;  %v2802_v11 = vand.u32 4294901760, %v2801_v4 }
 0x24c   :  { %v2803_v60 = vsub.f32 %v2801_v4, %v2802_v11 }
 0x24d   :  { %4340 = vmatpush3.bf16.msra.mxu1 %v4337_v25 }
 0x24e   :  { %4342 = vmatprep.subr.bf16.mxu1 %v4341_v35  ;;  %v2804_v29 = vand.u32 4294901760, %v2803_v60 }
 0x250   :  { %4054 = vmatmul.mubr.f32.vlgmr.msra.gmra.mrb[4].mxu1 %v5322_v19 }
 0x251   :  { %4344 = vmatpush3.bf16.msra.mxu1 %v4341_v35  ;;  %4064 = vmatprep.mubr.f32.mxu1 %v5217_v26  ;;  %v4413_v35 = vpack.c.bf16 %v2790_v12, %v2783_v46 }
 0x252   :  { %4346 = vmatprep.subr.bf16.mxu1 %v4345_v56 }
 0x255   :  { %4348 = vmatpush3.bf16.msra.mxu1 %v4345_v56 }
 0x256   :  { %4350 = vmatprep.subr.bf16.mxu1 %v4349_v33 }
 0x258   :  { %4065 = vmatmul.mubr.f32.vlgmr.msra.gmra.mrb[4].mxu1 %v5312_v49 }
 0x259   :  { %4352 = vmatpush3.bf16.msra.mxu1 %v4349_v33  ;;  %4075 = vmatprep.mubr.f32.mxu1 %v5279_v40  ;;  %v4421_v33 = vpack.c.bf16 %v2787_v5, %v2780_v2 }
 0x25a   :  { %4354 = vmatprep.subr.bf16.mxu1 %v4353_v54 }
 0x25d   :  { %4356 = vmatpush3.bf16.msra.mxu1 %v4353_v54 }
 0x25e   :  { %4358 = vmatprep.subr.bf16.mxu1 %v4333_v23 }
 0x260   :  { %4076 = vmatmul.mubr.f32.vlgmr.msra.gmra.mrb[4].mxu1 %v5315_v52 }
 0x261   :  { %4360 = vmatpush3.bf16.msra.mxu1 %v4333_v23  ;;  %4086 = vmatprep.mubr.f32.mxu1 %v5288_v39 }
 0x262   :  { %4362 = vmatprep.subr.bf16.mxu1 %v4337_v25 }
 0x265   :  { %4364 = vmatpush3.bf16.msra.mxu1 %v4337_v25 }
 0x266   :  { %4366 = vmatprep.subr.bf16.mxu1 %v4365_v30 }
 0x268   :  { %4087 = vmatmul.mubr.f32.vlgmr.msra.gmra.mrb[4].mxu1 %v5318_v55 }
 0x269   :  { %4368 = vmatpush3.bf16.msra.mxu1 %v4365_v30  ;;  %4097 = vmatprep.mubr.f32.mxu1 %v5217_v26 }
 0x26a   :  { %4370 = vmatprep.subr.bf16.mxu1 %v4369_v61 }
 0x26d   :  { %4372 = vmatpush3.bf16.msra.mxu1 %v4369_v61 }
 0x26e   :  { %4374 = vmatprep.subr.bf16.mxu1 %v4333_v23 }
 0x270   :  { %4098 = vmatmul.mubr.f32.vlgmr.msra.gmra.mrb[4].mxu1 %v5312_v49 }
 0x271   :  { %4376 = vmatpush3.bf16.msra.mxu1 %v4333_v23  ;;  %4108 = vmatprep.mubr.f32.mxu1 %v5217_v26  ;;  %v2696_v23 = vand.u32 4294901760, %v598_v58 }
 0x272   :  { %4378 = vmatprep.subr.bf16.mxu1 %v4337_v25 }
 0x273   :  { %v2794_v1 = vsub.f32 %v598_v58, %v2696_v23 }
 0x275   :  { %4380 = vmatpush3.bf16.msra.mxu1 %v4337_v25  ;;  %v2795_v9 = vand.u32 4294901760, %v2794_v1  ;;  %v4409_v25 = vpack.c.bf16 %v2699_v63, %v2696_v23  ;;  %v4425_v54 = vpack.c.bf16 %v2801_v4, %v2794_v1 }
 0x276   :  { %4382 = vmatprep.subr.bf16.mxu1 %v5342_v22 }
 0x277   :  { %v2796_v14 = vsub.f32 %v2794_v1, %v2795_v9 }
 0x278   :  { %4109 = vmatmul.mubr.f32.vlgmr.msra.gmra.mrb[4].mxu1 %v5312_v49 }
 0x279   :  { %4384 = vmatpush3.bf16.msra.mxu1 %v5342_v22  ;;  %v2797_v44 = vand.u32 4294901760, %v2796_v14 }
 0x27a   :  { %4454 = vmatprep.subr.bf16.mxu1 %v5342_v22 }
 0x27b   :  { %v4417_v56 = vpack.c.bf16 %v2804_v29, %v2797_v44 }
 0x31b   :  { %v4044_v34 = vpop.f32.mrb[2].mxu1 }
 0x31c   :  { %1649 = vst.msk [vmem:[#allocation16 + $0x8] sm:$0xff] %vm1139_vm7, %v4044_v34  ;;  %v1638_v53 = vpop.f32.mrb[3].mxu1 }
 0x31d   :  { %1648 = vst.msk [vmem:[#allocation16] sm:$0xff] %vm1139_vm7, %v1638_v53 }
 0x34b   :  { %v4110_v13 = vpop.f32.mrb[4].mxu1 }
 0x34c   :  { %v2182_v41 = vsel %vm1139_vm7, %v4110_v13, 0  ;;  %v2168_v42 = vpop.f32.mrb[5].mxu1 }
 0x34d   :  { %v2261_v43 = vand.u32 4294901760, %v2182_v41  ;;  %v2179_v45 = vsel %vm1139_vm7, %v2168_v42, 0 }
 0x34e   :  { %v2251_v32 = vand.u32 4294901760, %v2179_v45 }
 0x34f   :  { %v2262_v17 = vsub.f32 %v2182_v41, %v2261_v43 }
 0x350   :  { %v2252_v51 = vsub.f32 %v2179_v45, %v2251_v32  ;;  %4122 = vmatprep.mubr.f32.mxu0 %v2251_v32 }
 0x351   :  { %v2263_v36 = vand.u32 4294901760, %v2262_v17  ;;  %4123 = vmatmul.mubr.f32.vlgmr.msra.gmra.mrb[2].mxu0 %v2261_v43 }
 0x352   :  { %v2253_v10 = vand.u32 4294901760, %v2252_v51  ;;  %4392 = vmatpush3.bf16.msra.mxu0 %v5351_v38  ;;  %4129 = vmatprep.mubr.f32.mxu0 %v2252_v51 }
 0x353   :  { %v2264_v8 = vsub.f32 %v2262_v17, %v2263_v36  ;;  %4394 = vmatprep.subr.bf16.mxu0 %v5342_v22 }
 0x354   :  { %v2254_v27 = vsub.f32 %v2252_v51, %v2253_v10 }
 0x355   :  { %v2265_v48 = vand.u32 4294901760, %v2264_v8 }
 0x356   :  { %v2255_v57 = vand.u32 4294901760, %v2254_v27 }
 0x358   :  { %4115 = vmatprep.mubr.f32.mxu1 %v2255_v57 }
 0x359   :  { %4116 = vmatmul.mubr.f32.vlgmr.msra.gmra.mrb[6].mxu1 %v2265_v48  ;;  %4130 = vmatmul.mubr.f32.vlgmr.msra.gmra.mrb[2].mxu0 %v2262_v17 }
 0x35a   :  { %4396 = vmatpush3.bf16.msra.mxu0 %v5342_v22  ;;  %4136 = vmatprep.mubr.f32.mxu0 %v2253_v10 }
 0x35b   :  { %4398 = vmatprep.subr.bf16.mxu0 %v5354_v37  ;;  %4456 = vmatpush3.bf16.msra.mxu1 %v5342_v22 }
 0x35c   :  { %4458 = vmatprep.subr.bf16.mxu1 %v5346_v31 }
 0x361   :  { %4137 = vmatmul.mubr.f32.vlgmr.msra.gmra.mrb[2].mxu0 %v2263_v36 }
 0x362   :  { %4400 = vmatpush3.bf16.msra.mxu0 %v5354_v37  ;;  %4143 = vmatprep.mubr.f32.mxu0 %v2251_v32 }
 0x363   :  { %4402 = vmatprep.subr.bf16.mxu0 %v5342_v22 }
 0x369   :  { %4144 = vmatmul.mubr.f32.vlgmr.msra.gmra.mrb[2].mxu0 %v2261_v43 }
 0x36a   :  { %4404 = vmatpush3.bf16.msra.mxu0 %v5342_v22  ;;  %4150 = vmatprep.mubr.f32.mxu0 %v2251_v32 }
 0x36b   :  { %4406 = vmatprep.subr.bf16.mxu0 %v4405_v0 }
 0x371   :  { %4151 = vmatmul.mubr.f32.vlgmr.msra.gmra.mrb[2].mxu0 %v2261_v43 }
 0x372   :  { %4408 = vmatpush3.bf16.msra.mxu0 %v4405_v0  ;;  %4161 = vmatprep.mubr.f32.mxu0 %v5294_v20  ;;  %v4437_v20 = vpack.c.bf16 %v2788_v18, %v2781_v3 }
 0x373   :  { %4410 = vmatprep.subr.bf16.mxu0 %v4409_v25 }
 0x376   :  { %4412 = vmatpush3.bf16.msra.mxu0 %v4409_v25 }
 0x377   :  { %4414 = vmatprep.subr.bf16.mxu0 %v4413_v35 }
 0x379   :  { %4162 = vmatmul.mubr.f32.vlgmr.msra.gmra.mrb[4].mxu0 %v5322_v19  ;;  %v4441_v19 = vpack.c.bf16 %v2802_v11, %v2795_v9 }
 0x37a   :  { %4416 = vmatpush3.bf16.msra.mxu0 %v4413_v35  ;;  %4172 = vmatprep.mubr.f32.mxu0 %v5217_v26 }
 0x37b   :  { %4418 = vmatprep.subr.bf16.mxu0 %v4417_v56 }
 0x37e   :  { %4420 = vmatpush3.bf16.msra.mxu0 %v4417_v56 }
 0x37f   :  { %4422 = vmatprep.subr.bf16.mxu0 %v4421_v33 }
 0x381   :  { %4173 = vmatmul.mubr.f32.vlgmr.msra.gmra.mrb[4].mxu0 %v5312_v49 }
 0x382   :  { %4424 = vmatpush3.bf16.msra.mxu0 %v4421_v33  ;;  %4183 = vmatprep.mubr.f32.mxu0 %v5279_v40 }
 0x383   :  { %4426 = vmatprep.subr.bf16.mxu0 %v4425_v54 }
 0x386   :  { %4428 = vmatpush3.bf16.msra.mxu0 %v4425_v54 }
 0x387   :  { %4430 = vmatprep.subr.bf16.mxu0 %v4405_v0 }
 0x389   :  { %4184 = vmatmul.mubr.f32.vlgmr.msra.gmra.mrb[4].mxu0 %v5315_v52 }
 0x38a   :  { %4432 = vmatpush3.bf16.msra.mxu0 %v4405_v0  ;;  %4194 = vmatprep.mubr.f32.mxu0 %v5288_v39 }
 0x38b   :  { %4434 = vmatprep.subr.bf16.mxu0 %v4409_v25 }
 0x38e   :  { %4436 = vmatpush3.bf16.msra.mxu0 %v4409_v25 }
 0x38f   :  { %4438 = vmatprep.subr.bf16.mxu0 %v4437_v20 }
 0x391   :  { %4195 = vmatmul.mubr.f32.vlgmr.msra.gmra.mrb[4].mxu0 %v5318_v55 }
 0x392   :  { %4440 = vmatpush3.bf16.msra.mxu0 %v4437_v20  ;;  %4205 = vmatprep.mubr.f32.mxu0 %v5217_v26 }
 0x393   :  { %4442 = vmatprep.subr.bf16.mxu0 %v4441_v19 }
 0x396   :  { %4444 = vmatpush3.bf16.msra.mxu0 %v4441_v19 }
 0x397   :  { %4446 = vmatprep.subr.bf16.mxu0 %v4405_v0 }
 0x399   :  { %4206 = vmatmul.mubr.f32.vlgmr.msra.gmra.mrb[4].mxu0 %v5312_v49 }
 0x39a   :  { %4448 = vmatpush3.bf16.msra.mxu0 %v4405_v0  ;;  %4216 = vmatprep.mubr.f32.mxu0 %v5217_v26 }
 0x39b   :  { %4450 = vmatprep.subr.bf16.mxu0 %v4409_v25 }
 0x39e   :  { %4452 = vmatpush3.bf16.msra.mxu0 %v4409_v25 }
 0x3a1   :  { %4217 = vmatmul.mubr.f32.vlgmr.msra.gmra.mrb[4].mxu0 %v5312_v49 }
 0x42c   :  { %v4117_v40 = vpop.f32.mrb[6].mxu1 }
 0x42d   :  { %v2257_v39 = vpop.f32.mrb[7].mxu1 }
 0x444   :  { %v4152_v52 = vpop.f32.mrb[2].mxu0 }
 0x445   :  { %v4479_v30 = vadd.f32 %v4152_v52, %v4117_v40  ;;  %v2676_v55 = vpop.f32.mrb[3].mxu0 }
 0x446   :  { %v4480_v61 = vadd.f32 %v2676_v55, %v2257_v39 }
 0x447   :  { %2688 = vst.msk [vmem:[#allocation16 + $0x18] sm:$0xff] %vm1139_vm7, %v4479_v30 }
 0x448   :  { %2687 = vst.msk [vmem:[#allocation16 + $0x10] sm:$0xff] %vm1139_vm7, %v4480_v61 }
 0x474   :  { %v4218_v34 = vpop.f32.mrb[4].mxu0 }
 0x475   :  { %v3221_v53 = vsel %vm1139_vm7, %v4218_v34, 0  ;;  %v3207_v13 = vpop.f32.mrb[5].mxu0 }
 0x476   :  { %v3300_v41 = vand.u32 4294901760, %v3221_v53  ;;  %v3218_v26 = vsel %vm1139_vm7, %v3207_v13, 0 }
 0x477   :  { %v3290_v42 = vand.u32 4294901760, %v3218_v26 }
 0x478   :  { %v3301_v43 = vsub.f32 %v3221_v53, %v3300_v41 }
 0x479   :  { %v3291_v49 = vsub.f32 %v3218_v26, %v3290_v42 }
 0x47a   :  { %v3302_v45 = vand.u32 4294901760, %v3301_v43 }
 0x47b   :  { %v3292_v32 = vand.u32 4294901760, %v3291_v49 }
 0x47c   :  { %v3303_v17 = vsub.f32 %v3301_v43, %v3302_v45 }
 0x47d   :  { %v3293_v51 = vsub.f32 %v3291_v49, %v3292_v32 }
 0x47e   :  { %v3304_v10 = vand.u32 4294901760, %v3303_v17 }
 0x47f   :  { %v3294_v36 = vand.u32 4294901760, %v3293_v51 }
 0x481   :  { %4223 = vmatprep.mubr.f32.mxu1 %v3294_v36 }
 0x482   :  { %4224 = vmatmul.mubr.f32.vlgmr.msra.gmra.mrb[8].mxu1 %v3304_v10 }
 0x483   :  { %4460 = vmatpush3.bf16.msra.mxu1 %v5346_v31  ;;  %4230 = vmatprep.mubr.f32.mxu1 %v3290_v42 }
 0x484   :  { %4462 = vmatprep.subr.bf16.mxu1 %v5351_v38 }
 0x48a   :  { %4231 = vmatmul.mubr.f32.vlgmr.msra.gmra.mrb[8].mxu1 %v3300_v41 }
 0x48b   :  { %4464 = vmatpush3.bf16.msra.mxu1 %v5351_v38  ;;  %4237 = vmatprep.mubr.f32.mxu1 %v3291_v49 }
 0x48c   :  { %4466 = vmatprep.subr.bf16.mxu1 %v5342_v22 }
 0x492   :  { %4238 = vmatmul.mubr.f32.vlgmr.msra.gmra.mrb[8].mxu1 %v3301_v43 }
 0x493   :  { %4468 = vmatpush3.bf16.msra.mxu1 %v5342_v22  ;;  %4244 = vmatprep.mubr.f32.mxu1 %v3292_v32 }
 0x494   :  { %4470 = vmatprep.subr.bf16.mxu1 %v5354_v37 }
 0x49a   :  { %4245 = vmatmul.mubr.f32.vlgmr.msra.gmra.mrb[8].mxu1 %v3302_v45 }
 0x49b   :  { %4472 = vmatpush3.bf16.msra.mxu1 %v5354_v37  ;;  %4251 = vmatprep.mubr.f32.mxu1 %v3290_v42 }
 0x49c   :  { %4474 = vmatprep.subr.bf16.mxu1 %v5342_v22 }
 0x4a2   :  { %4252 = vmatmul.mubr.f32.vlgmr.msra.gmra.mrb[8].mxu1 %v3300_v41 }
 0x4a3   :  { %4476 = vmatpush3.bf16.msra.mxu1 %v5342_v22  ;;  %4258 = vmatprep.mubr.f32.mxu1 %v3290_v42 }
 0x4aa   :  { %4259 = vmatmul.mubr.f32.vlgmr.msra.gmra.mrb[8].mxu1 %v3300_v41 }
 0x57d   :  { %v4260_v31 = vpop.f32.mrb[8].mxu1 }
 0x57e   :  { %3727 = vst.msk [vmem:[#allocation16 + $0x28] sm:$0xff] %vm1139_vm7, %v4260_v31  ;;  %v3715_v38 = vpop.f32.mrb[9].mxu1 }
 0x57f   :  { %3726 = vst.msk [vmem:[#allocation16 + $0x20] sm:$0xff] %vm1139_vm7, %v3715_v38 }
 0x580   :  { %4774 = shalt.err (!%p4771_p10)
}
 0x581   :  { %s4775_s16 = scalar_lea.hbm %s5481_s8, 768 }
 0x582   :  { %p4776_p11 = scmp.ne.s32.totalorder %s5481_s8, %s4775_s16  ;;  %p4779_p12 = scmp.lt.u32.totalorder %s4775_s16, %s5481_s8 }
 0x584   :  { %p4781_p13 = pnand %p4779_p12, %p4776_p11 }
 0x586   :  { %4784 = shalt.err (!%p4781_p13)
}
 0x587   :  { %3739 = dma.vmem_to_hbm [thread:$0]  %s3734_s24, 768, %s5481_s8, [#allocation4], %s4799_s17, %s4799_s17, %s4800_s18  }
 0x588   :  { %4795 = dma.done.wait [#allocation4], 768  }
 0x589   :  { %4796 = vsyncadd [#allocation4], 4294966528 }
 0x58a   :  { %3743 = vsyncpa [#allocation3], 1 }
 0x58b   :  { %3744 = vsyncpa [#allocation6], 1 }
 0x58c   :  { %3745 = vsyncpa [#allocation9], 1 }
 0x58d   :  { %3746 = vsyncpa [#allocation12], 1 }
 0x58e   :  { %3747 = vsyncpa [#allocation15], 1 }
 0x58f   :  { %3748 = vsyncpa [#allocation4], 1 }

</bundles_post_ra>
